<compile_context>
chip_gen: v7x
topology: tpu7x:2x2x1
jax: 0.10.0
libtpu: 0.0.40
codegen_flags: <defaults>
</compile_context>

<pallas_src>
import math
import functools

import jax
import jax.numpy as jnp
from jax import lax
from jax.experimental import pallas as pl
from jax.experimental.pallas import tpu as pltpu


# -----------------------------------------------------------------------------
# Helpers
# -----------------------------------------------------------------------------
def _layernorm(x, g, b, eps=1e-5):
    mu = jnp.mean(x, axis=-1, keepdims=True)
    var = jnp.mean((x - mu) ** 2, axis=-1, keepdims=True)
    return (x - mu) * lax.rsqrt(var + eps) * g + b


def _nbytes(a):
    return int(a.size) * jnp.dtype(a.dtype).itemsize


# -----------------------------------------------------------------------------
# Fused Pallas kernel: one grid step = (batch b, layer l)
# -----------------------------------------------------------------------------
def transformer_kernel(x_ref, wqkv_ref, wu_ref, bu_ref,
                       g1_ref, b1_ref, g2_ref, b2_ref,
                       w1_ref, bb1_ref, w2_ref, bb2_ref,
                       wfc_ref, bfc_ref,
                       out_ref,
                       resid_ref,
                       *, heads):
    f32 = jnp.float32
    bf16 = jnp.bfloat16

    l = pl.program_id(1)
    n_layers = pl.num_programs(1)

    T, C = resid_ref.shape
    H = heads
    S = C // H
    inv_sqrt_s = 1.0 / math.sqrt(S)

    # Residual stream lives in a persistent VMEM scratch; (re-)init per batch.
    @pl.when(l == 0)
    def _():
        resid_ref[...] = x_ref[0].astype(f32)

    x = resid_ref[...]                               # (T, C) f32

    # --- attention sublayer --------------------------------------------------
    x1 = _layernorm(x, g1_ref[0], b1_ref[0]).astype(bf16)
    qkv = jnp.dot(x1, wqkv_ref[0], preferred_element_type=f32)   # (T, 3C) f32
    qb = qkv[:, 0 * C:1 * C].astype(bf16)
    kb = qkv[:, 1 * C:2 * C].astype(bf16)
    vb = qkv[:, 2 * C:3 * C].astype(bf16)

    # Per-(T,T) causal mask from iotas (cheap VPU work, no (B*T)^2 residency).
    row = lax.broadcasted_iota(jnp.int32, (T, T), 0)
    col = lax.broadcasted_iota(jnp.int32, (T, T), 1)
    causal = col > row                               # True => -inf

    wu = wu_ref[0]                                   # (C, C) bf16
    att = jnp.zeros((T, C), f32)
    for h in range(H):                               # tiny static unroll
        sl = slice(h * S, (h + 1) * S)
        # transpose-B folded into dot_general (no materialized XLU transpose)
        sc = lax.dot_general(qb[:, sl], kb[:, sl],
                             (((1,), (1,)), ((), ())),
                             preferred_element_type=f32) * inv_sqrt_s  # (T, T)
        sc = jnp.where(causal, -1e30, sc)
        sc = sc - jnp.max(sc, axis=-1, keepdims=True)
        p = jnp.exp(sc)
        p = p * pl.reciprocal(jnp.sum(p, axis=-1, keepdims=True), approx=True)
        head_out = jnp.dot(p.astype(bf16), vb[:, sl],
                           preferred_element_type=f32)                 # (T, S)
        # Fold this head straight into the unify projection (no scratch store).
        att = att + jnp.dot(head_out.astype(bf16), wu[sl, :],
                            preferred_element_type=f32)                # (T, C)

    x = x + att + bu_ref[0]                          # residual 1

    # --- feed-forward sublayer -----------------------------------------------
    x2 = _layernorm(x, g2_ref[0], b2_ref[0]).astype(bf16)
    hdn = jnp.maximum(
        jnp.dot(x2, w1_ref[0], preferred_element_type=f32) + bb1_ref[0], 0.0)
    ff = jnp.dot(hdn.astype(bf16), w2_ref[0],
                 preferred_element_type=f32) + bb2_ref[0]
    x = x + ff                                       # residual 2
    resid_ref[...] = x

    # --- LM head + log_softmax on the final layer step ------------------------
    @pl.when(l == n_layers - 1)
    def _():
        logits = jnp.dot(x.astype(bf16), wfc_ref[...],
                         preferred_element_type=f32) + bfc_ref[...]    # (T, Vp)
        m = jnp.max(logits, axis=-1, keepdims=True)
        lse = jnp.log(jnp.sum(jnp.exp(logits - m), axis=-1, keepdims=True)) + m
        out_ref[0] = (logits - lse).astype(out_ref.dtype)


# -----------------------------------------------------------------------------
# Wrapper
# -----------------------------------------------------------------------------
def transformer_fwd(tokens, params, heads):
    """Full model forward. tokens: (B, T) int32 -> log-probs (B, T, V)."""
    B, T = tokens.shape
    C = params["emb"].shape[1]
    V = params["w_fc"].shape[1]
    Vp = ((V + 127) // 128) * 128                    # lane-dense output width
    L = params["wq"].shape[0]
    H = heads

    # Embedding + positional embedding (gather glue stays in plain JAX).
    x = (params["emb"][tokens] + params["pos_emb"][:T][None]).astype(jnp.float32)

    # Fused QKV weight: (L, C, 3C) bf16.
    wqkv = jnp.concatenate([params["wq"], params["wk"], params["wv"]], axis=-1)

    # Pad vocab dim to a multiple of 128; padded columns get bias -1e30 (f32)
    # so the log_softmax over the padded width equals the one over V columns.
    w_fc = params["w_fc"]
    b_fc = params["b_fc"]
    if Vp != V:
        w_fc = jnp.pad(w_fc, ((0, 0), (0, Vp - V)))
        b_fc = jnp.pad(b_fc, ((0, 0), (0, Vp - V)), constant_values=-1e30)

    args = [x, wqkv, params["wu"], params["bu"],
            params["g1"], params["b1"], params["g2"], params["b2"],
            params["w1"], params["bb1"], params["w2"], params["bb2"],
            w_fc, b_fc]

    # Per-layer streamed weight bytes (double-buffered by BlockSpec) + resident
    # bits (head weights, activations, output block, scratch). Clamp < 64 MiB.
    per_layer_w = sum(_nbytes(a) // L for a in
                      (wqkv, params["wu"], params["bu"], params["g1"],
                       params["b1"], params["g2"], params["b2"],
                       params["w1"], params["bb1"], params["w2"],
                       params["bb2"]))
    resident = _nbytes(w_fc) + _nbytes(b_fc) + (2 * T * C + 2 * T * Vp) * 4
    vmem_limit = int(min(48 << 20, max(16 << 20, 4 * per_layer_w + resident)))

    flops_layer = (2 * T * C * 3 * C       # fused QKV
                   + 2 * T * T * C         # scores (all heads)
                   + 2 * T * T * C         # P @ V
                   + 2 * T * C * C         # unify
                   + 2 * T * C * 4 * C     # ff1
                   + 2 * T * 4 * C * C)    # ff2
    cost = pl.CostEstimate(
        flops=B * (L * flops_layer + 2 * T * C * Vp),
        transcendentals=B * (L * H * T * T + T * Vp),
        bytes_accessed=sum(_nbytes(a) for a in args) + B * T * Vp * 4,
    )

    layer_map = lambda b, l: (l, 0, 0)
    out = pl.pallas_call(
        functools.partial(transformer_kernel, heads=heads),
        out_shape=jax.ShapeDtypeStruct((B, T, Vp), jnp.float32),
        grid_spec=pltpu.PrefetchScalarGridSpec(
            num_scalar_prefetch=0,
            grid=(B, L),
            in_specs=[
                pl.BlockSpec((1, T, C), lambda b, l: (b, 0, 0)),      # x
                pl.BlockSpec((1, C, 3 * C), layer_map),               # wqkv
                pl.BlockSpec((1, C, C), layer_map),                   # wu
                pl.BlockSpec((1, 1, C), layer_map),                   # bu
                pl.BlockSpec((1, 1, C), layer_map),                   # g1
                pl.BlockSpec((1, 1, C), layer_map),                   # b1
                pl.BlockSpec((1, 1, C), layer_map),                   # g2
                pl.BlockSpec((1, 1, C), layer_map),                   # b2
                pl.BlockSpec((1, C, 4 * C), layer_map),               # w1
                pl.BlockSpec((1, 1, 4 * C), layer_map),               # bb1
                pl.BlockSpec((1, 4 * C, C), layer_map),               # w2
                pl.BlockSpec((1, 1, C), layer_map),                   # bb2
                pl.BlockSpec((C, Vp), lambda b, l: (0, 0)),           # w_fc
                pl.BlockSpec((1, Vp), lambda b, l: (0, 0)),           # b_fc
            ],
            out_specs=pl.BlockSpec((1, T, Vp), lambda b, l: (b, 0, 0)),
            scratch_shapes=[pltpu.VMEM((T, C), jnp.float32)],         # residual
        ),
        compiler_params=pltpu.CompilerParams(
            dimension_semantics=("parallel", "arbitrary"),
            vmem_limit_bytes=vmem_limit),
        cost_estimate=cost,
    )(*args)

    return out[:, :, :V]


# -----------------------------------------------------------------------------
# Pure-JAX reference (mirrors the kernel's bf16 matmul discipline)
# -----------------------------------------------------------------------------
def _ref_model(tokens, params, heads):
    B, T = tokens.shape
    C = params["emb"].shape[1]
    H, S = heads, C // heads
    L = params["wq"].shape[0]
    bf16 = jnp.bfloat16

    def mm(a, w):
        return jnp.dot(a.astype(bf16), w.astype(bf16),
                       preferred_element_type=jnp.float32)

    x = params["emb"][tokens] + params["pos_emb"][:T][None]
    mask = jnp.triu(jnp.ones((T, T), bool), 1)
    for l in range(L):
        x1 = _layernorm(x, params["g1"][l], params["b1"][l])
        q = mm(x1, params["wq"][l]).reshape(B, T, H, S).transpose(0, 2, 1, 3)
        k = mm(x1, params["wk"][l]).reshape(B, T, H, S).transpose(0, 2, 1, 3)
        v = mm(x1, params["wv"][l]).reshape(B, T, H, S).transpose(0, 2, 1, 3)
        sc = jnp.einsum("bhqs,bhks->bhqk", q.astype(bf16), k.astype(bf16),
                        preferred_element_type=jnp.float32) / math.sqrt(S)
        sc = jnp.where(mask, -1e30, sc)
        p = jax.nn.softmax(sc, axis=-1)
        o = jnp.einsum("bhqk,bhks->bhqs", p.astype(bf16), v.astype(bf16),
                       preferred_element_type=jnp.float32)
        o = o.transpose(0, 2, 1, 3).reshape(B, T, C)
        x = x + mm(o, params["wu"][l]) + params["bu"][l]
        x2 = _layernorm(x, params["g2"][l], params["b2"][l])
        h1 = jnp.maximum(mm(x2, params["w1"][l]) + params["bb1"][l], 0.0)
        x = x + mm(h1, params["w2"][l]) + params["bb2"][l]
    logits = mm(x, params["w_fc"]) + params["b_fc"]
    return jax.nn.log_softmax(logits, axis=-1)


# -----------------------------------------------------------------------------
# Parameter init (layer weights stacked along a leading layer axis)
# -----------------------------------------------------------------------------
def init_params(key, vocab_size, seq_length, emb_size, heads, num_layers):
    C = emb_size
    L = num_layers
    keys = jax.random.split(key, 14)
    scale = 0.02
    bscale = 0.05
    bf16 = jnp.bfloat16

    def nrm(k, shape, s=scale):
        return jax.random.normal(k, shape, jnp.float32) * s

    return dict(
        emb=nrm(keys[0], (vocab_size, C)),
        pos_emb=nrm(keys[1], (seq_length, C)),
        wq=nrm(keys[2], (L, C, C)).astype(bf16),
        wk=nrm(keys[3], (L, C, C)).astype(bf16),
        wv=nrm(keys[4], (L, C, C)).astype(bf16),
        wu=nrm(keys[5], (L, C, C)).astype(bf16),
        bu=nrm(keys[6], (L, 1, C), bscale),
        g1=jnp.ones((L, 1, C), jnp.float32),
        b1=jnp.zeros((L, 1, C), jnp.float32),
        g2=jnp.ones((L, 1, C), jnp.float32),
        b2=jnp.zeros((L, 1, C), jnp.float32),
        w1=nrm(keys[7], (L, C, 4 * C)).astype(bf16),
        bb1=nrm(keys[8], (L, 1, 4 * C), bscale),
        w2=nrm(keys[9], (L, 4 * C, C)).astype(bf16),
        bb2=nrm(keys[10], (L, 1, C), bscale),
        w_fc=nrm(keys[11], (C, vocab_size)).astype(bf16),
        b_fc=nrm(keys[12], (1, vocab_size), bscale),
    )


# -----------------------------------------------------------------------------
if __name__ == "__main__":
    vocab_size = 64
    seq_length = 16
    emb_size = 32
    heads = 4
    num_layers = 2
    B, T = 2, seq_length

    key = jax.random.PRNGKey(0)
    kp, kt = jax.random.split(key)
    params = init_params(kp, vocab_size, seq_length, emb_size, heads, num_layers)
    tokens = jax.random.randint(kt, (B, T), 0, vocab_size, dtype=jnp.int32)

    fwd = jax.jit(transformer_fwd, static_argnums=(2,))
    out = jax.block_until_ready(fwd(tokens, params, heads))
    assert out.shape == (B, T, vocab_size)

    # Numerical self-check against a pure-JAX reference using the same
    # bf16-operand / f32-accumulate matmul discipline (tolerance covers the
    # approximate EUP reciprocal used in the kernel's softmax).
    ref = jax.block_until_ready(_ref_model(tokens, params, heads))
    assert bool(jnp.all(jnp.isfinite(out)))
    err = float(jnp.max(jnp.abs(out - ref)))
    assert err < 3e-2, f"max abs err {err}"

    print("KERNEL_OK")
</pallas_src>

<mosaic_0001>
module attributes {stable_mosaic.version = 11 : i64} {
  func.func @transformer_kernel(%arg0: i32, %arg1: i32, %arg2: memref<1x16x32xf32, #tpu.memory_space<vmem>>, %arg3: memref<1x32x96xbf16, #tpu.memory_space<vmem>>, %arg4: memref<1x32x32xbf16, #tpu.memory_space<vmem>>, %arg5: memref<1x1x32xf32, #tpu.memory_space<vmem>>, %arg6: memref<1x1x32xf32, #tpu.memory_space<vmem>>, %arg7: memref<1x1x32xf32, #tpu.memory_space<vmem>>, %arg8: memref<1x1x32xf32, #tpu.memory_space<vmem>>, %arg9: memref<1x1x32xf32, #tpu.memory_space<vmem>>, %arg10: memref<1x32x128xbf16, #tpu.memory_space<vmem>>, %arg11: memref<1x1x128xf32, #tpu.memory_space<vmem>>, %arg12: memref<1x128x32xbf16, #tpu.memory_space<vmem>>, %arg13: memref<1x1x32xf32, #tpu.memory_space<vmem>>, %arg14: memref<32x128xbf16, #tpu.memory_space<vmem>>, %arg15: memref<1x128xf32, #tpu.memory_space<vmem>>, %arg16: memref<1x16x128xf32, #tpu.memory_space<vmem>>, %arg17: memref<16x32xf32, #tpu.memory_space<vmem>>) attributes {dimension_semantics = [#tpu.dimension_semantics<parallel>, #tpu.dimension_semantics<arbitrary>], iteration_bounds = array<i64: 2, 2>, scalar_prefetch = 0 : i64, scratch_operands = 1 : i64, tpu.core_type = #tpu.core_type<tc>, window_params = [{transform_indices = @transform_0, window_bounds = array<i64: 1, 16, 32>}, {transform_indices = @transform_1, window_bounds = array<i64: 1, 32, 96>}, {transform_indices = @transform_2, window_bounds = array<i64: 1, 32, 32>}, {transform_indices = @transform_3, window_bounds = array<i64: 1, 1, 32>}, {transform_indices = @transform_4, window_bounds = array<i64: 1, 1, 32>}, {transform_indices = @transform_5, window_bounds = array<i64: 1, 1, 32>}, {transform_indices = @transform_6, window_bounds = array<i64: 1, 1, 32>}, {transform_indices = @transform_7, window_bounds = array<i64: 1, 1, 32>}, {transform_indices = @transform_8, window_bounds = array<i64: 1, 32, 128>}, {transform_indices = @transform_9, window_bounds = array<i64: 1, 1, 128>}, {transform_indices = @transform_10, window_bounds = array<i64: 1, 128, 32>}, {transform_indices = @transform_11, window_bounds = array<i64: 1, 1, 32>}, {pipeline_mode = #tpu.pipeline_mode<synchronous>, transform_indices = @transform_12, window_bounds = array<i64: 32, 128>}, {pipeline_mode = #tpu.pipeline_mode<synchronous>, transform_indices = @transform_13, window_bounds = array<i64: 1, 128>}, {transform_indices = @transform_14, window_bounds = array<i64: 1, 16, 128>}]} {
    %c0_i32 = arith.constant 0 : i32
    %0 = arith.cmpi eq, %arg1, %c0_i32 : i32
    %1 = arith.extui %0 : i1 to i32
    %c0_i32_0 = arith.constant 0 : i32
    %2 = arith.cmpi ne, %1, %c0_i32_0 : i32
    scf.if %2 {
      %c0_80 = arith.constant 0 : index
      %c0_81 = arith.constant 0 : index
      %c0_82 = arith.constant 0 : index
      %196 = vector.load %arg2[%c0_80, %c0_81, %c0_82] : memref<1x16x32xf32, #tpu.memory_space<vmem>>, vector<1x16x32xf32>
      %197 = vector.shape_cast %196 : vector<1x16x32xf32> to vector<16x32xf32>
      %c0_83 = arith.constant 0 : index
      %c0_84 = arith.constant 0 : index
      %198 = vector.load %arg17[%c0_83, %c0_84] : memref<16x32xf32, #tpu.memory_space<vmem>>, vector<16x32xf32>
      tpu.vector_store %arg17[%c0_83, %c0_84], %197 {strides = array<i32>} : memref<16x32xf32, #tpu.memory_space<vmem>>, vector<16x32xf32>,
    } else {
    }
    %c0 = arith.constant 0 : index
    %c0_1 = arith.constant 0 : index
    %3 = vector.load %arg17[%c0, %c0_1] : memref<16x32xf32, #tpu.memory_space<vmem>>, vector<16x32xf32>
    %c0_2 = arith.constant 0 : index
    %c0_3 = arith.constant 0 : index
    %c0_4 = arith.constant 0 : index
    %4 = vector.load %arg6[%c0_2, %c0_3, %c0_4] : memref<1x1x32xf32, #tpu.memory_space<vmem>>, vector<1x1x32xf32>
    %5 = vector.shape_cast %4 : vector<1x1x32xf32> to vector<1x32xf32>
    %c0_5 = arith.constant 0 : index
    %c0_6 = arith.constant 0 : index
    %c0_7 = arith.constant 0 : index
    %6 = vector.load %arg7[%c0_5, %c0_6, %c0_7] : memref<1x1x32xf32, #tpu.memory_space<vmem>>, vector<1x1x32xf32>
    %7 = vector.shape_cast %6 : vector<1x1x32xf32> to vector<1x32xf32>
    %cst = arith.constant dense<0.000000e+00> : vector<16xf32>
    %8 = vector.multi_reduction <add>, %3, %cst [1] : vector<16x32xf32> to vector<16xf32>
    %9 = vector.shape_cast %8 : vector<16xf32> to vector<16x1xf32>
    %cst_8 = arith.constant 3.200000e+01 : f32
    %10 = vector.broadcast %cst_8 : f32 to vector<16x1xf32>
    %11 = arith.divf %9, %10 : vector<16x1xf32>
    %12 = vector.broadcast %11 : vector<16x1xf32> to vector<16x32xf32>
    %13 = arith.subf %3, %12 : vector<16x32xf32>
    %14 = arith.mulf %13, %13 : vector<16x32xf32>
    %cst_9 = arith.constant dense<0.000000e+00> : vector<16xf32>
    %15 = vector.multi_reduction <add>, %14, %cst_9 [1] : vector<16x32xf32> to vector<16xf32>
    %16 = vector.shape_cast %15 : vector<16xf32> to vector<16x1xf32>
    %cst_10 = arith.constant 3.200000e+01 : f32
    %17 = vector.broadcast %cst_10 : f32 to vector<16x1xf32>
    %18 = arith.divf %16, %17 : vector<16x1xf32>
    %19 = vector.broadcast %11 : vector<16x1xf32> to vector<16x32xf32>
    %20 = arith.subf %3, %19 : vector<16x32xf32>
    %cst_11 = arith.constant 9.99999974E-6 : f32
    %21 = vector.broadcast %cst_11 : f32 to vector<16x1xf32>
    %22 = arith.addf %18, %21 : vector<16x1xf32>
    %23 = math.rsqrt %22 : vector<16x1xf32>
    %24 = vector.broadcast %23 : vector<16x1xf32> to vector<16x32xf32>
    %25 = arith.mulf %20, %24 : vector<16x32xf32>
    %26 = vector.broadcast %5 : vector<1x32xf32> to vector<16x32xf32>
    %27 = arith.mulf %25, %26 : vector<16x32xf32>
    %28 = vector.broadcast %7 : vector<1x32xf32> to vector<16x32xf32>
    %29 = arith.addf %27, %28 : vector<16x32xf32>
    %30 = arith.truncf %29 : vector<16x32xf32> to vector<16x32xbf16>
    %c0_12 = arith.constant 0 : index
    %c0_13 = arith.constant 0 : index
    %c0_14 = arith.constant 0 : index
    %31 = vector.load %arg3[%c0_12, %c0_13, %c0_14] : memref<1x32x96xbf16, #tpu.memory_space<vmem>>, vector<1x32x96xbf16>
    %32 = vector.shape_cast %31 : vector<1x32x96xbf16> to vector<32x96xbf16>
    %cst_15 = arith.constant dense<0.000000e+00> : vector<16x96xf32>
    %33 = tpu.matmul %30, %32, %cst_15 {dimension_numbers = #tpu.dot_dimension_numbers<[1], [0], [0], [1], [0, 0, 1, 1], [], []>} : vector<16x32xbf16>, vector<32x96xbf16>, vector<16x96xf32> -> vector<16x96xf32>
    %34 = vector.extract_strided_slice %33 {offsets = [0, 0], sizes = [16, 32], strides = [1, 1]} : vector<16x96xf32> to vector<16x32xf32>
    %35 = arith.truncf %34 : vector<16x32xf32> to vector<16x32xbf16>
    %36 = vector.extract_strided_slice %33 {offsets = [0, 32], sizes = [16, 32], strides = [1, 1]} : vector<16x96xf32> to vector<16x32xf32>
    %37 = arith.truncf %36 : vector<16x32xf32> to vector<16x32xbf16>
    %38 = vector.extract_strided_slice %33 {offsets = [0, 64], sizes = [16, 32], strides = [1, 1]} : vector<16x96xf32> to vector<16x32xf32>
    %39 = arith.truncf %38 : vector<16x32xf32> to vector<16x32xbf16>
    %40 = tpu.iota {dimensions = array<i32: 0>} : vector<16x16xi32>
    %41 = tpu.iota {dimensions = array<i32: 1>} : vector<16x16xi32>
    %42 = arith.cmpi sgt, %41, %40 : vector<16x16xi32>
    %c0_16 = arith.constant 0 : index
    %c0_17 = arith.constant 0 : index
    %c0_18 = arith.constant 0 : index
    %43 = vector.load %arg4[%c0_16, %c0_17, %c0_18] : memref<1x32x32xbf16, #tpu.memory_space<vmem>>, vector<1x32x32xbf16>
    %44 = vector.shape_cast %43 : vector<1x32x32xbf16> to vector<32x32xbf16>
    %cst_19 = arith.constant 0.000000e+00 : f32
    %45 = vector.broadcast %cst_19 : f32 to vector<16x32xf32>
    %46 = vector.extract_strided_slice %35 {offsets = [0, 0], sizes = [16, 8], strides = [1, 1]} : vector<16x32xbf16> to vector<16x8xbf16>
    %47 = vector.extract_strided_slice %37 {offsets = [0, 0], sizes = [16, 8], strides = [1, 1]} : vector<16x32xbf16> to vector<16x8xbf16>
    %cst_20 = arith.constant dense<0.000000e+00> : vector<16x16xf32>
    %48 = tpu.matmul %46, %47, %cst_20 {dimension_numbers = #tpu.dot_dimension_numbers<[1], [1], [0], [0], [0, 0, 1, 0], [], []>} : vector<16x8xbf16>, vector<16x8xbf16>, vector<16x16xf32> -> vector<16x16xf32>
    %cst_21 = arith.constant 0.353553385 : f32
    %49 = vector.broadcast %cst_21 : f32 to vector<16x16xf32>
    %50 = arith.mulf %48, %49 : vector<16x16xf32>
    %cst_22 = arith.constant -1.000000e+30 : f32
    %51 = vector.broadcast %cst_22 : f32 to vector<16x16xf32>
    %52 = arith.select %42, %51, %50 : vector<16x16xi1>, vector<16x16xf32>
    %cst_23 = arith.constant dense<0xFF800000> : vector<16xf32>
    %53 = vector.multi_reduction <maximumf>, %52, %cst_23 [1] : vector<16x16xf32> to vector<16xf32>
    %54 = vector.shape_cast %53 : vector<16xf32> to vector<16x1xf32>
    %55 = vector.broadcast %54 : vector<16x1xf32> to vector<16x16xf32>
    %56 = arith.subf %52, %55 : vector<16x16xf32>
    %57 = math.exp %56 : vector<16x16xf32>
    %cst_24 = arith.constant dense<0.000000e+00> : vector<16xf32>
    %58 = vector.multi_reduction <add>, %57, %cst_24 [1] : vector<16x16xf32> to vector<16xf32>
    %59 = vector.shape_cast %58 : vector<16xf32> to vector<16x1xf32>
    %60 = tpu.reciprocal %59 {approx = true} : vector<16x1xf32> -> vector<16x1xf32>
    %61 = vector.broadcast %60 : vector<16x1xf32> to vector<16x16xf32>
    %62 = arith.mulf %57, %61 : vector<16x16xf32>
    %63 = arith.truncf %62 : vector<16x16xf32> to vector<16x16xbf16>
    %64 = vector.extract_strided_slice %39 {offsets = [0, 0], sizes = [16, 8], strides = [1, 1]} : vector<16x32xbf16> to vector<16x8xbf16>
    %cst_25 = arith.constant dense<0.000000e+00> : vector<16x8xf32>
    %65 = tpu.matmul %63, %64, %cst_25 {dimension_numbers = #tpu.dot_dimension_numbers<[1], [0], [0], [1], [0, 0, 1, 1], [], []>} : vector<16x16xbf16>, vector<16x8xbf16>, vector<16x8xf32> -> vector<16x8xf32>
    %66 = arith.truncf %65 : vector<16x8xf32> to vector<16x8xbf16>
    %67 = vector.extract_strided_slice %44 {offsets = [0, 0], sizes = [8, 32], strides = [1, 1]} : vector<32x32xbf16> to vector<8x32xbf16>
    %cst_26 = arith.constant dense<0.000000e+00> : vector<16x32xf32>
    %68 = tpu.matmul %66, %67, %cst_26 {dimension_numbers = #tpu.dot_dimension_numbers<[1], [0], [0], [1], [0, 0, 1, 1], [], []>} : vector<16x8xbf16>, vector<8x32xbf16>, vector<16x32xf32> -> vector<16x32xf32>
    %69 = arith.addf %45, %68 : vector<16x32xf32>
    %70 = vector.extract_strided_slice %35 {offsets = [0, 8], sizes = [16, 8], strides = [1, 1]} : vector<16x32xbf16> to vector<16x8xbf16>
    %71 = vector.extract_strided_slice %37 {offsets = [0, 8], sizes = [16, 8], strides = [1, 1]} : vector<16x32xbf16> to vector<16x8xbf16>
    %cst_27 = arith.constant dense<0.000000e+00> : vector<16x16xf32>
    %72 = tpu.matmul %70, %71, %cst_27 {dimension_numbers = #tpu.dot_dimension_numbers<[1], [1], [0], [0], [0, 0, 1, 0], [], []>} : vector<16x8xbf16>, vector<16x8xbf16>, vector<16x16xf32> -> vector<16x16xf32>
    %cst_28 = arith.constant 0.353553385 : f32
    %73 = vector.broadcast %cst_28 : f32 to vector<16x16xf32>
    %74 = arith.mulf %72, %73 : vector<16x16xf32>
    %cst_29 = arith.constant -1.000000e+30 : f32
    %75 = vector.broadcast %cst_29 : f32 to vector<16x16xf32>
    %76 = arith.select %42, %75, %74 : vector<16x16xi1>, vector<16x16xf32>
    %cst_30 = arith.constant dense<0xFF800000> : vector<16xf32>
    %77 = vector.multi_reduction <maximumf>, %76, %cst_30 [1] : vector<16x16xf32> to vector<16xf32>
    %78 = vector.shape_cast %77 : vector<16xf32> to vector<16x1xf32>
    %79 = vector.broadcast %78 : vector<16x1xf32> to vector<16x16xf32>
    %80 = arith.subf %76, %79 : vector<16x16xf32>
    %81 = math.exp %80 : vector<16x16xf32>
    %cst_31 = arith.constant dense<0.000000e+00> : vector<16xf32>
    %82 = vector.multi_reduction <add>, %81, %cst_31 [1] : vector<16x16xf32> to vector<16xf32>
    %83 = vector.shape_cast %82 : vector<16xf32> to vector<16x1xf32>
    %84 = tpu.reciprocal %83 {approx = true} : vector<16x1xf32> -> vector<16x1xf32>
    %85 = vector.broadcast %84 : vector<16x1xf32> to vector<16x16xf32>
    %86 = arith.mulf %81, %85 : vector<16x16xf32>
    %87 = arith.truncf %86 : vector<16x16xf32> to vector<16x16xbf16>
    %88 = vector.extract_strided_slice %39 {offsets = [0, 8], sizes = [16, 8], strides = [1, 1]} : vector<16x32xbf16> to vector<16x8xbf16>
    %cst_32 = arith.constant dense<0.000000e+00> : vector<16x8xf32>
    %89 = tpu.matmul %87, %88, %cst_32 {dimension_numbers = #tpu.dot_dimension_numbers<[1], [0], [0], [1], [0, 0, 1, 1], [], []>} : vector<16x16xbf16>, vector<16x8xbf16>, vector<16x8xf32> -> vector<16x8xf32>
    %90 = arith.truncf %89 : vector<16x8xf32> to vector<16x8xbf16>
    %91 = vector.extract_strided_slice %44 {offsets = [8, 0], sizes = [8, 32], strides = [1, 1]} : vector<32x32xbf16> to vector<8x32xbf16>
    %cst_33 = arith.constant dense<0.000000e+00> : vector<16x32xf32>
    %92 = tpu.matmul %90, %91, %cst_33 {dimension_numbers = #tpu.dot_dimension_numbers<[1], [0], [0], [1], [0, 0, 1, 1], [], []>} : vector<16x8xbf16>, vector<8x32xbf16>, vector<16x32xf32> -> vector<16x32xf32>
    %93 = arith.addf %69, %92 : vector<16x32xf32>
    %94 = vector.extract_strided_slice %35 {offsets = [0, 16], sizes = [16, 8], strides = [1, 1]} : vector<16x32xbf16> to vector<16x8xbf16>
    %95 = vector.extract_strided_slice %37 {offsets = [0, 16], sizes = [16, 8], strides = [1, 1]} : vector<16x32xbf16> to vector<16x8xbf16>
    %cst_34 = arith.constant dense<0.000000e+00> : vector<16x16xf32>
    %96 = tpu.matmul %94, %95, %cst_34 {dimension_numbers = #tpu.dot_dimension_numbers<[1], [1], [0], [0], [0, 0, 1, 0], [], []>} : vector<16x8xbf16>, vector<16x8xbf16>, vector<16x16xf32> -> vector<16x16xf32>
    %cst_35 = arith.constant 0.353553385 : f32
    %97 = vector.broadcast %cst_35 : f32 to vector<16x16xf32>
    %98 = arith.mulf %96, %97 : vector<16x16xf32>
    %cst_36 = arith.constant -1.000000e+30 : f32
    %99 = vector.broadcast %cst_36 : f32 to vector<16x16xf32>
    %100 = arith.select %42, %99, %98 : vector<16x16xi1>, vector<16x16xf32>
    %cst_37 = arith.constant dense<0xFF800000> : vector<16xf32>
    %101 = vector.multi_reduction <maximumf>, %100, %cst_37 [1] : vector<16x16xf32> to vector<16xf32>
    %102 = vector.shape_cast %101 : vector<16xf32> to vector<16x1xf32>
    %103 = vector.broadcast %102 : vector<16x1xf32> to vector<16x16xf32>
    %104 = arith.subf %100, %103 : vector<16x16xf32>
    %105 = math.exp %104 : vector<16x16xf32>
    %cst_38 = arith.constant dense<0.000000e+00> : vector<16xf32>
    %106 = vector.multi_reduction <add>, %105, %cst_38 [1] : vector<16x16xf32> to vector<16xf32>
    %107 = vector.shape_cast %106 : vector<16xf32> to vector<16x1xf32>
    %108 = tpu.reciprocal %107 {approx = true} : vector<16x1xf32> -> vector<16x1xf32>
    %109 = vector.broadcast %108 : vector<16x1xf32> to vector<16x16xf32>
    %110 = arith.mulf %105, %109 : vector<16x16xf32>
    %111 = arith.truncf %110 : vector<16x16xf32> to vector<16x16xbf16>
    %112 = vector.extract_strided_slice %39 {offsets = [0, 16], sizes = [16, 8], strides = [1, 1]} : vector<16x32xbf16> to vector<16x8xbf16>
    %cst_39 = arith.constant dense<0.000000e+00> : vector<16x8xf32>
    %113 = tpu.matmul %111, %112, %cst_39 {dimension_numbers = #tpu.dot_dimension_numbers<[1], [0], [0], [1], [0, 0, 1, 1], [], []>} : vector<16x16xbf16>, vector<16x8xbf16>, vector<16x8xf32> -> vector<16x8xf32>
    %114 = arith.truncf %113 : vector<16x8xf32> to vector<16x8xbf16>
    %115 = vector.extract_strided_slice %44 {offsets = [16, 0], sizes = [8, 32], strides = [1, 1]} : vector<32x32xbf16> to vector<8x32xbf16>
    %cst_40 = arith.constant dense<0.000000e+00> : vector<16x32xf32>
    %116 = tpu.matmul %114, %115, %cst_40 {dimension_numbers = #tpu.dot_dimension_numbers<[1], [0], [0], [1], [0, 0, 1, 1], [], []>} : vector<16x8xbf16>, vector<8x32xbf16>, vector<16x32xf32> -> vector<16x32xf32>
    %117 = arith.addf %93, %116 : vector<16x32xf32>
    %118 = vector.extract_strided_slice %35 {offsets = [0, 24], sizes = [16, 8], strides = [1, 1]} : vector<16x32xbf16> to vector<16x8xbf16>
    %119 = vector.extract_strided_slice %37 {offsets = [0, 24], sizes = [16, 8], strides = [1, 1]} : vector<16x32xbf16> to vector<16x8xbf16>
    %cst_41 = arith.constant dense<0.000000e+00> : vector<16x16xf32>
    %120 = tpu.matmul %118, %119, %cst_41 {dimension_numbers = #tpu.dot_dimension_numbers<[1], [1], [0], [0], [0, 0, 1, 0], [], []>} : vector<16x8xbf16>, vector<16x8xbf16>, vector<16x16xf32> -> vector<16x16xf32>
    %cst_42 = arith.constant 0.353553385 : f32
    %121 = vector.broadcast %cst_42 : f32 to vector<16x16xf32>
    %122 = arith.mulf %120, %121 : vector<16x16xf32>
    %cst_43 = arith.constant -1.000000e+30 : f32
    %123 = vector.broadcast %cst_43 : f32 to vector<16x16xf32>
    %124 = arith.select %42, %123, %122 : vector<16x16xi1>, vector<16x16xf32>
    %cst_44 = arith.constant dense<0xFF800000> : vector<16xf32>
    %125 = vector.multi_reduction <maximumf>, %124, %cst_44 [1] : vector<16x16xf32> to vector<16xf32>
    %126 = vector.shape_cast %125 : vector<16xf32> to vector<16x1xf32>
    %127 = vector.broadcast %126 : vector<16x1xf32> to vector<16x16xf32>
    %128 = arith.subf %124, %127 : vector<16x16xf32>
    %129 = math.exp %128 : vector<16x16xf32>
    %cst_45 = arith.constant dense<0.000000e+00> : vector<16xf32>
    %130 = vector.multi_reduction <add>, %129, %cst_45 [1] : vector<16x16xf32> to vector<16xf32>
    %131 = vector.shape_cast %130 : vector<16xf32> to vector<16x1xf32>
    %132 = tpu.reciprocal %131 {approx = true} : vector<16x1xf32> -> vector<16x1xf32>
    %133 = vector.broadcast %132 : vector<16x1xf32> to vector<16x16xf32>
    %134 = arith.mulf %129, %133 : vector<16x16xf32>
    %135 = arith.truncf %134 : vector<16x16xf32> to vector<16x16xbf16>
    %136 = vector.extract_strided_slice %39 {offsets = [0, 24], sizes = [16, 8], strides = [1, 1]} : vector<16x32xbf16> to vector<16x8xbf16>
    %cst_46 = arith.constant dense<0.000000e+00> : vector<16x8xf32>
    %137 = tpu.matmul %135, %136, %cst_46 {dimension_numbers = #tpu.dot_dimension_numbers<[1], [0], [0], [1], [0, 0, 1, 1], [], []>} : vector<16x16xbf16>, vector<16x8xbf16>, vector<16x8xf32> -> vector<16x8xf32>
    %138 = arith.truncf %137 : vector<16x8xf32> to vector<16x8xbf16>
    %139 = vector.extract_strided_slice %44 {offsets = [24, 0], sizes = [8, 32], strides = [1, 1]} : vector<32x32xbf16> to vector<8x32xbf16>
    %cst_47 = arith.constant dense<0.000000e+00> : vector<16x32xf32>
    %140 = tpu.matmul %138, %139, %cst_47 {dimension_numbers = #tpu.dot_dimension_numbers<[1], [0], [0], [1], [0, 0, 1, 1], [], []>} : vector<16x8xbf16>, vector<8x32xbf16>, vector<16x32xf32> -> vector<16x32xf32>
    %141 = arith.addf %117, %140 : vector<16x32xf32>
    %142 = arith.addf %3, %141 : vector<16x32xf32>
    %c0_48 = arith.constant 0 : index
    %c0_49 = arith.constant 0 : index
    %c0_50 = arith.constant 0 : index
    %143 = vector.load %arg5[%c0_48, %c0_49, %c0_50] : memref<1x1x32xf32, #tpu.memory_space<vmem>>, vector<1x1x32xf32>
    %144 = vector.shape_cast %143 : vector<1x1x32xf32> to vector<1x32xf32>
    %145 = vector.broadcast %144 : vector<1x32xf32> to vector<16x32xf32>
    %146 = arith.addf %142, %145 : vector<16x32xf32>
    %c0_51 = arith.constant 0 : index
    %c0_52 = arith.constant 0 : index
    %c0_53 = arith.constant 0 : index
    %147 = vector.load %arg8[%c0_51, %c0_52, %c0_53] : memref<1x1x32xf32, #tpu.memory_space<vmem>>, vector<1x1x32xf32>
    %148 = vector.shape_cast %147 : vector<1x1x32xf32> to vector<1x32xf32>
    %c0_54 = arith.constant 0 : index
    %c0_55 = arith.constant 0 : index
    %c0_56 = arith.constant 0 : index
    %149 = vector.load %arg9[%c0_54, %c0_55, %c0_56] : memref<1x1x32xf32, #tpu.memory_space<vmem>>, vector<1x1x32xf32>
    %150 = vector.shape_cast %149 : vector<1x1x32xf32> to vector<1x32xf32>
    %cst_57 = arith.constant dense<0.000000e+00> : vector<16xf32>
    %151 = vector.multi_reduction <add>, %146, %cst_57 [1] : vector<16x32xf32> to vector<16xf32>
    %152 = vector.shape_cast %151 : vector<16xf32> to vector<16x1xf32>
    %cst_58 = arith.constant 3.200000e+01 : f32
    %153 = vector.broadcast %cst_58 : f32 to vector<16x1xf32>
    %154 = arith.divf %152, %153 : vector<16x1xf32>
    %155 = vector.broadcast %154 : vector<16x1xf32> to vector<16x32xf32>
    %156 = arith.subf %146, %155 : vector<16x32xf32>
    %157 = arith.mulf %156, %156 : vector<16x32xf32>
    %cst_59 = arith.constant dense<0.000000e+00> : vector<16xf32>
    %158 = vector.multi_reduction <add>, %157, %cst_59 [1] : vector<16x32xf32> to vector<16xf32>
    %159 = vector.shape_cast %158 : vector<16xf32> to vector<16x1xf32>
    %cst_60 = arith.constant 3.200000e+01 : f32
    %160 = vector.broadcast %cst_60 : f32 to vector<16x1xf32>
    %161 = arith.divf %159, %160 : vector<16x1xf32>
    %162 = vector.broadcast %154 : vector<16x1xf32> to vector<16x32xf32>
    %163 = arith.subf %146, %162 : vector<16x32xf32>
    %cst_61 = arith.constant 9.99999974E-6 : f32
    %164 = vector.broadcast %cst_61 : f32 to vector<16x1xf32>
    %165 = arith.addf %161, %164 : vector<16x1xf32>
    %166 = math.rsqrt %165 : vector<16x1xf32>
    %167 = vector.broadcast %166 : vector<16x1xf32> to vector<16x32xf32>
    %168 = arith.mulf %163, %167 : vector<16x32xf32>
    %169 = vector.broadcast %148 : vector<1x32xf32> to vector<16x32xf32>
    %170 = arith.mulf %168, %169 : vector<16x32xf32>
    %171 = vector.broadcast %150 : vector<1x32xf32> to vector<16x32xf32>
    %172 = arith.addf %170, %171 : vector<16x32xf32>
    %173 = arith.truncf %172 : vector<16x32xf32> to vector<16x32xbf16>
    %c0_62 = arith.constant 0 : index
    %c0_63 = arith.constant 0 : index
    %c0_64 = arith.constant 0 : index
    %174 = vector.load %arg10[%c0_62, %c0_63, %c0_64] : memref<1x32x128xbf16, #tpu.memory_space<vmem>>, vector<1x32x128xbf16>
    %175 = vector.shape_cast %174 : vector<1x32x128xbf16> to vector<32x128xbf16>
    %cst_65 = arith.constant dense<0.000000e+00> : vector<16x128xf32>
    %176 = tpu.matmul %173, %175, %cst_65 {dimension_numbers = #tpu.dot_dimension_numbers<[1], [0], [0], [1], [0, 0, 1, 1], [], []>} : vector<16x32xbf16>, vector<32x128xbf16>, vector<16x128xf32> -> vector<16x128xf32>
    %c0_66 = arith.constant 0 : index
    %c0_67 = arith.constant 0 : index
    %c0_68 = arith.constant 0 : index
    %177 = vector.load %arg11[%c0_66, %c0_67, %c0_68] : memref<1x1x128xf32, #tpu.memory_space<vmem>>, vector<1x1x128xf32>
    %178 = vector.shape_cast %177 : vector<1x1x128xf32> to vector<1x128xf32>
    %179 = vector.broadcast %178 : vector<1x128xf32> to vector<16x128xf32>
    %180 = arith.addf %176, %179 : vector<16x128xf32>
    %cst_69 = arith.constant 0.000000e+00 : f32
    %181 = vector.broadcast %cst_69 : f32 to vector<16x128xf32>
    %182 = arith.maximumf %180, %181 : vector<16x128xf32>
    %183 = arith.truncf %182 : vector<16x128xf32> to vector<16x128xbf16>
    %c0_70 = arith.constant 0 : index
    %c0_71 = arith.constant 0 : index
    %c0_72 = arith.constant 0 : index
    %184 = vector.load %arg12[%c0_70, %c0_71, %c0_72] : memref<1x128x32xbf16, #tpu.memory_space<vmem>>, vector<1x128x32xbf16>
    %185 = vector.shape_cast %184 : vector<1x128x32xbf16> to vector<128x32xbf16>
    %cst_73 = arith.constant dense<0.000000e+00> : vector<16x32xf32>
    %186 = tpu.matmul %183, %185, %cst_73 {dimension_numbers = #tpu.dot_dimension_numbers<[1], [0], [0], [1], [0, 0, 1, 1], [], []>} : vector<16x128xbf16>, vector<128x32xbf16>, vector<16x32xf32> -> vector<16x32xf32>
    %c0_74 = arith.constant 0 : index
    %c0_75 = arith.constant 0 : index
    %c0_76 = arith.constant 0 : index
    %187 = vector.load %arg13[%c0_74, %c0_75, %c0_76] : memref<1x1x32xf32, #tpu.memory_space<vmem>>, vector<1x1x32xf32>
    %188 = vector.shape_cast %187 : vector<1x1x32xf32> to vector<1x32xf32>
    %189 = vector.broadcast %188 : vector<1x32xf32> to vector<16x32xf32>
    %190 = arith.addf %186, %189 : vector<16x32xf32>
    %191 = arith.addf %146, %190 : vector<16x32xf32>
    %c0_77 = arith.constant 0 : index
    %c0_78 = arith.constant 0 : index
    %192 = vector.load %arg17[%c0_77, %c0_78] : memref<16x32xf32, #tpu.memory_space<vmem>>, vector<16x32xf32>
    tpu.vector_store %arg17[%c0_77, %c0_78], %191 {strides = array<i32>} : memref<16x32xf32, #tpu.memory_space<vmem>>, vector<16x32xf32>,
    %c1_i32 = arith.constant 1 : i32
    %193 = arith.cmpi eq, %arg1, %c1_i32 : i32
    %194 = arith.extui %193 : i1 to i32
    %c0_i32_79 = arith.constant 0 : i32
    %195 = arith.cmpi ne, %194, %c0_i32_79 : i32
    scf.if %195 {
      %196 = arith.truncf %191 : vector<16x32xf32> to vector<16x32xbf16>
      %c0_80 = arith.constant 0 : index
      %c0_81 = arith.constant 0 : index
      %197 = vector.load %arg14[%c0_80, %c0_81] : memref<32x128xbf16, #tpu.memory_space<vmem>>, vector<32x128xbf16>
      %cst_82 = arith.constant dense<0.000000e+00> : vector<16x128xf32>
      %198 = tpu.matmul %196, %197, %cst_82 {dimension_numbers = #tpu.dot_dimension_numbers<[1], [0], [0], [1], [0, 0, 1, 1], [], []>} : vector<16x32xbf16>, vector<32x128xbf16>, vector<16x128xf32> -> vector<16x128xf32>
      %c0_83 = arith.constant 0 : index
      %c0_84 = arith.constant 0 : index
      %199 = vector.load %arg15[%c0_83, %c0_84] : memref<1x128xf32, #tpu.memory_space<vmem>>, vector<1x128xf32>
      %200 = vector.broadcast %199 : vector<1x128xf32> to vector<16x128xf32>
      %201 = arith.addf %198, %200 : vector<16x128xf32>
      %cst_85 = arith.constant dense<0xFF800000> : vector<16xf32>
      %202 = vector.multi_reduction <maximumf>, %201, %cst_85 [1] : vector<16x128xf32> to vector<16xf32>
      %203 = vector.shape_cast %202 : vector<16xf32> to vector<16x1xf32>
      %204 = vector.broadcast %203 : vector<16x1xf32> to vector<16x128xf32>
      %205 = arith.subf %201, %204 : vector<16x128xf32>
      %206 = math.exp %205 : vector<16x128xf32>
      %cst_86 = arith.constant dense<0.000000e+00> : vector<16xf32>
      %207 = vector.multi_reduction <add>, %206, %cst_86 [1] : vector<16x128xf32> to vector<16xf32>
      %208 = vector.shape_cast %207 : vector<16xf32> to vector<16x1xf32>
      %209 = math.log %208 : vector<16x1xf32>
      %210 = arith.addf %209, %203 : vector<16x1xf32>
      %211 = vector.broadcast %210 : vector<16x1xf32> to vector<16x128xf32>
      %212 = arith.subf %201, %211 : vector<16x128xf32>
      %c0_87 = arith.constant 0 : index
      %c0_88 = arith.constant 0 : index
      %c0_89 = arith.constant 0 : index
      %213 = vector.load %arg16[%c0_87, %c0_88, %c0_89] : memref<1x16x128xf32, #tpu.memory_space<vmem>>, vector<1x16x128xf32>
      %214 = vector.shape_cast %213 : vector<1x16x128xf32> to vector<16x128xf32>
      %215 = vector.shape_cast %212 : vector<16x128xf32> to vector<1x16x128xf32>
      tpu.vector_store %arg16[%c0_87, %c0_88, %c0_89], %215 {strides = array<i32>} : memref<1x16x128xf32, #tpu.memory_space<vmem>>, vector<1x16x128xf32>,
    } else {
    }
    return
  }
  func.func @transform_0(%arg0: i32, %arg1: i32) -> (i32, i32, i32) {
    %c0_i32 = arith.constant 0 : i32
    %c0_i32_0 = arith.constant 0 : i32
    %c0_i32_1 = arith.constant 0 : i32
    return %arg0, %c0_i32, %c0_i32_0 : i32, i32, i32
  }
  func.func @transform_1(%arg0: i32, %arg1: i32) -> (i32, i32, i32) {
    %c0_i32 = arith.constant 0 : i32
    %c0_i32_0 = arith.constant 0 : i32
    %c0_i32_1 = arith.constant 0 : i32
    return %arg1, %c0_i32, %c0_i32_0 : i32, i32, i32
  }
  func.func @transform_2(%arg0: i32, %arg1: i32) -> (i32, i32, i32) {
    %c0_i32 = arith.constant 0 : i32
    %c0_i32_0 = arith.constant 0 : i32
    %c0_i32_1 = arith.constant 0 : i32
    return %arg1, %c0_i32, %c0_i32_0 : i32, i32, i32
  }
  func.func @transform_3(%arg0: i32, %arg1: i32) -> (i32, i32, i32) {
    %c0_i32 = arith.constant 0 : i32
    %c0_i32_0 = arith.constant 0 : i32
    %c0_i32_1 = arith.constant 0 : i32
    return %arg1, %c0_i32, %c0_i32_0 : i32, i32, i32
  }
  func.func @transform_4(%arg0: i32, %arg1: i32) -> (i32, i32, i32) {
    %c0_i32 = arith.constant 0 : i32
    %c0_i32_0 = arith.constant 0 : i32
    %c0_i32_1 = arith.constant 0 : i32
    return %arg1, %c0_i32, %c0_i32_0 : i32, i32, i32
  }
  func.func @transform_5(%arg0: i32, %arg1: i32) -> (i32, i32, i32) {
    %c0_i32 = arith.constant 0 : i32
    %c0_i32_0 = arith.constant 0 : i32
    %c0_i32_1 = arith.constant 0 : i32
    return %arg1, %c0_i32, %c0_i32_0 : i32, i32, i32
  }
  func.func @transform_6(%arg0: i32, %arg1: i32) -> (i32, i32, i32) {
    %c0_i32 = arith.constant 0 : i32
    %c0_i32_0 = arith.constant 0 : i32
    %c0_i32_1 = arith.constant 0 : i32
    return %arg1, %c0_i32, %c0_i32_0 : i32, i32, i32
  }
  func.func @transform_7(%arg0: i32, %arg1: i32) -> (i32, i32, i32) {
    %c0_i32 = arith.constant 0 : i32
    %c0_i32_0 = arith.constant 0 : i32
    %c0_i32_1 = arith.constant 0 : i32
    return %arg1, %c0_i32, %c0_i32_0 : i32, i32, i32
  }
  func.func @transform_8(%arg0: i32, %arg1: i32) -> (i32, i32, i32) {
    %c0_i32 = arith.constant 0 : i32
    %c0_i32_0 = arith.constant 0 : i32
    %c0_i32_1 = arith.constant 0 : i32
    return %arg1, %c0_i32, %c0_i32_0 : i32, i32, i32
  }
  func.func @transform_9(%arg0: i32, %arg1: i32) -> (i32, i32, i32) {
    %c0_i32 = arith.constant 0 : i32
    %c0_i32_0 = arith.constant 0 : i32
    %c0_i32_1 = arith.constant 0 : i32
    return %arg1, %c0_i32, %c0_i32_0 : i32, i32, i32
  }
  func.func @transform_10(%arg0: i32, %arg1: i32) -> (i32, i32, i32) {
    %c0_i32 = arith.constant 0 : i32
    %c0_i32_0 = arith.constant 0 : i32
    %c0_i32_1 = arith.constant 0 : i32
    return %arg1, %c0_i32, %c0_i32_0 : i32, i32, i32
  }
  func.func @transform_11(%arg0: i32, %arg1: i32) -> (i32, i32, i32) {
    %c0_i32 = arith.constant 0 : i32
    %c0_i32_0 = arith.constant 0 : i32
    %c0_i32_1 = arith.constant 0 : i32
    return %arg1, %c0_i32, %c0_i32_0 : i32, i32, i32
  }
  func.func @transform_12(%arg0: i32, %arg1: i32) -> (i32, i32) {
    %c0_i32 = arith.constant 0 : i32
    %c0_i32_0 = arith.constant 0 : i32
    %c0_i32_1 = arith.constant 0 : i32
    return %c0_i32, %c0_i32_0 : i32, i32
  }
  func.func @transform_13(%arg0: i32, %arg1: i32) -> (i32, i32) {
    %c0_i32 = arith.constant 0 : i32
    %c0_i32_0 = arith.constant 0 : i32
    %c0_i32_1 = arith.constant 0 : i32
    return %c0_i32, %c0_i32_0 : i32, i32
  }
  func.func @transform_14(%arg0: i32, %arg1: i32) -> (i32, i32, i32) {
    %c0_i32 = arith.constant 0 : i32
    %c0_i32_0 = arith.constant 0 : i32
    %c0_i32_1 = arith.constant 0 : i32
    return %arg0, %c0_i32, %c0_i32_0 : i32, i32, i32
  }
}

</mosaic_0001>

<bundles_post_ra>
// kernel: transformer_fwd.1
= control target key start
LH: loop header
LB: loop body
LE: loop exit
PB: predicated region body
PF: predicated region fallthrough
CT: control target
= control target key end

     0   :  { %s3022_s0 = inlined_call_operand.vmem [shape: f32[2,16,32], index: 0, kind: input, shape index: {}]   ;;  %s3023_s1 = inlined_call_operand.vmem [shape: bf16[2,32,96], index: 1, kind: input, shape index: {}]   ;;  %s3024_s2 = inlined_call_operand.vmem [shape: bf16[2,32,32], index: 2, kind: input, shape index: {}]   ;;  %s3025_s3 = inlined_call_operand.vmem [shape: f32[2,1,32], index: 3, kind: input, shape index: {}]   ;;  %s3026_s4 = inlined_call_operand.vmem [shape: f32[2,1,32], index: 4, kind: input, shape index: {}]   ;;  %s3027_s5 = inlined_call_operand.vmem [shape: f32[2,1,32], index: 5, kind: input, shape index: {}]   ;;  %s3028_s6 = inlined_call_operand.vmem [shape: f32[2,1,32], index: 6, kind: input, shape index: {}]   ;;  %s3029_s7 = inlined_call_operand.vmem [shape: f32[2,1,32], index: 7, kind: input, shape index: {}]   ;;  %s3030_s8 = inlined_call_operand.vmem [shape: bf16[2,32,128], index: 8, kind: input, shape index: {}]   ;;  %s3031_s9 = inlined_call_operand.vmem [shape: f32[2,1,128], index: 9, kind: input, shape index: {}]   ;;  %s3032_s10 = inlined_call_operand.vmem [shape: bf16[2,128,32], index: 10, kind: input, shape index: {}]   ;;  %s3033_s11 = inlined_call_operand.vmem [shape: f32[2,1,32], index: 11, kind: input, shape index: {}]   ;;  %s3034_s12 = inlined_call_operand.vmem [shape: bf16[32,128], index: 12, kind: input, shape index: {}]   ;;  %s3035_s13 = inlined_call_operand.vmem [shape: f32[1,128], index: 13, kind: input, shape index: {}]   ;;  %s3036_s14 = inlined_call_operand.hbm [shape: f32[2,16,128], index: 14, kind: output, shape index: {}]  }
   0x1   :  { %3054 = sst [smem:[#allocation20_spill]] %s3022_s0 }
   0x2   :  { %3055 = sst [smem:[#allocation21_spill]] %s3023_s1 }
   0x3   :  { %3056 = sst [smem:[#allocation22_spill]] %s3024_s2 }
   0x4   :  { %3057 = sst [smem:[#allocation23_spill]] %s3034_s12 }
   0x5   :  { %3058 = sst [smem:[#allocation24_spill]] %s3035_s13 }
   0x6   :  { %3059 = sst [smem:[#allocation25_spill]] %s3036_s14 }
   0x7   :  { %19 = vsyncpa [#allocation4], 0 }
   0x8   :  { %21 = vsyncpa [#allocation4 + $0x1], 0  ;;  %s2584_s29 = smov 0   ;;  %s2586_s30 = smov 0  }
   0x9   :  { %s2588_s15 = smov 0   ;;  %s2590_s16 = smov 0  }
   0xa   :  { %s2592_s17 = smov 0   ;;  %s2594_s18 = smov 0  }
   0xb   :  { %s2596_s19 = smov 0   ;;  %s2598_s20 = smov 0  }
   0xc LB: > { %3060 = sst [smem:[#allocation6_spill]] %s2461_s29  ;;  %s2021_s21 = sadd.s32 4294967295, %s2489_s20   ;;  %s2489_s20 = sphi %s2598_s20, %s27_s20   ;;  %s2485_s19 = sphi %s2596_s19, %s3100_s19   ;;  %s2481_s18 = sphi %s2594_s18, %s3099_s18   ;;  %s2477_s17 = sphi %s2592_s17, %s3098_s17   ;;  %s2473_s16 = sphi %s2590_s16, %s3097_s16   ;;  %s2469_s15 = sphi %s2588_s15, %s3096_s15   ;;  %s2465_s30 = sphi %s2586_s30, %s3095_s30   ;;  %s2461_s29 = sphi %s2584_s29, %s3094_s29  }
   0xd   : > { %3061 = sst [smem:[#allocation7_spill]] %s2465_s30  ;;  %s2022_s22 = sadd.s32 4294967294, %s2489_s20  }
   0xe   : > { %3062 = sst [smem:[#allocation8_spill]] %s2469_s15  ;;  %s36_s23 = sadd.s32 1, %s2481_s18 }
   0xf   : > { %3063 = sst [smem:[#allocation9_spill]] %s2477_s17  ;;  %p37_p0 = scmp.ge.s32.totalorder %s36_s23, 2 }
  0x10   : > { %3064 = sst [smem:[#allocation10_spill]] %s2481_s18  ;;  %s39_s24 = sadd.s32 1, %s2485_s19 }
  0x11   : > { %3065 = sst [smem:[#allocation11_spill]] %s2485_s19  ;;  %p410_p1 = scmp.ne.s32.totalorder %s2469_s15, %s2465_s30 }
  0x12   : > { %3066 = sst [smem:[#allocation12_spill]] %s2489_s20  ;;  %p411_p2 = scmp.eq.s32.totalorder %s2021_s21, 3 }
  0x13   : > { %s3102_s23 = smov (%p37_p0, %s36_s23), 0  ;;  %s3104_s24 = smov (!%p37_p0, %s39_s24), %s2485_s19 }
  0x14   : > { %3067 = sst [smem:[#allocation13_spill]] %s3102_s23  ;;  %p2633_p3 = por %p411_p2, %p410_p1 }
  0x15   : > { %p416_p4 = scmp.ne.s32.totalorder %s2465_s30, %s2461_s29  ;;  %p41_p5 = scmp.ge.s32.totalorder %s3104_s24, 2 }
  0x16   : > { %s3068_s25 = scalar_select %p2633_p3, 1, 0 }
  0x17   : > { %p417_p6 = scmp.eq.s32.totalorder %s2022_s22, 3  ;;  %p2025_p7 = scmp.ge.s32.totalorder %s2489_s20, 1 }
  0x18   : > { %3069 = sst [smem:[#allocation14_spill]] %s3068_s25  ;;  %p523_p8 = scmp.lt.s32.totalorder %s2489_s20, 5 }
  0x19   : > { %s3106_s24 = smov (%p41_p5, %s3104_s24), 0  ;;  %p2643_p9 = por %p417_p6, %p416_p4 }
  0x1a   : > { %3070 = sst [smem:[#allocation15_spill]] %s3106_s24  ;;  %p524_p10 = pnand %p2025_p7, %p523_p8 }
  0x1b   : > { %s3071_s26 = scalar_select %p2643_p9, 1, 0 }
  0x1c   : > { %s397_s27 = ssub.s32 %s2485_s19, %s3106_s24  ;;  %s400_s28 = sadd.s32 1, %s2469_s15 }
  0x1d   : > { %3072 = sst [smem:[#allocation16_spill]] %s3071_s26  ;;  %p398_p11 = scmp.eq.s32.totalorder %s397_s27, 0 }
  0x1e   : > { %527 = sbr.rel (%p524_p10) target bundleno = 4850 (0x12f2), region = 76 }
  0x1f   : > { %s2651_s21 = scalar_select %p398_p11, %s2469_s15, %s400_s28  }
  0x21   : > { %3073 = sst [smem:[#allocation17_spill]] %s2651_s21 }
  0x25   : > { %s3041_s22 = sand.u32 1, %s2465_s30   ;;  %p610_p12 = scmp.lt.s32.totalorder %s2477_s17, 1 }
  0x26   : > { %s2026_s23 = sshll.u32 %s3041_s22, 4  ;;  %p615_p13 = scmp.lt.s32.totalorder %s2473_s16, 1 }
  0x27   : > { %s611_s18 = scalar_select %p610_p12, %s2477_s17, 1 }
  0x28   : > { %s2660_s26 = scalar_select %p615_p13, %s2473_s16, 1 }
  0x29   : > { %s2081_s27 = sshll.u32 %s611_s18, 4  ;;  %s3074_s0 = sld [smem:[#allocation20_spill]] }
  0x2a   : > { %s2082_s21 = sshll.u32 %s2660_s26, 4  ;;  %s3075_s1 = sld [smem:[#allocation21_spill]] }
  0x2b   : > { %s3077_s2 = sld [smem:[#allocation22_spill]]  ;;  %s630_s24 = scalar_lea.vmem %s3026_s4, %s2660_s26 }
  0x2c   : > { %s639_s20 = scalar_lea.vmem %s3029_s7, %s2660_s26  ;;  %s2699_s30 = scalar_lea.vmem %s3030_s8, %s2082_s21 }
  0x2d   : > { %s647_s18 = scalar_lea.vmem %s3031_s9, %s2660_s26  ;;  %s2085_s13 = sshll.u32 %s2660_s26, 6 }
  0x2e   : > { %s2715_s14 = scalar_lea.vmem [#allocation3], %s2026_s23  ;;  %p2037_p0 = scmp.ne.s32.totalorder %s2473_s16, 0 }
  0x2f   : > { %s614_s19 = scalar_lea.vmem %s3074_s0, %s2081_s27  ;;  %s2709_s0 = scalar_lea.vmem %s3032_s10, %s2085_s13  ;;  %vm663_vm0 = vcmask (!%p2037_p0), 261120  }
  0x30   : > { %s2669_s29 = scalar_lea.vmem %s3075_s1, %s2082_s21  ;;  %s636_s1 = scalar_lea.vmem %s3028_s6, %s2660_s26  ;;  %v661_v0 = vld [vmem:[%s614_s19] sm:$0xff] (!%p2037_p0)  ;;  %v662_v1 = vld [vmem:[%s614_s19 + $0x8] sm:$0xff] (!%p2037_p0) }
  0x31   : > { %3076 = sst [smem:[#allocation18_spill]] %s2669_s29  ;;  %s2674_s25 = scalar_lea.vmem %s3077_s2, %s2082_s21  ;;  %664 = vst.msk [vmem:[#allocation2] sm:$0xff] (!%p2037_p0), %vm663_vm0, %v661_v0  ;;  %665 = vst.msk [vmem:[#allocation2 + $0x8] sm:$0xff] (!%p2037_p0), %vm663_vm0, %v662_v1 }
  0x32   : > { %3078 = sst [smem:[#allocation19_spill]] %s2674_s25  ;;  %s655_s29 = scalar_lea.vmem %s3033_s11, %s2660_s26 }
  0x33   : > { %660 = sbr.rel (%p2037_p0) target bundleno = 58 (0x3a), region = 80 }
  0x3a PF: > { %v2718_v2 = vld [vmem:[#allocation2] sm:$0xff]  ;;  %vm670_vm1 = vcmask 261120   ;;  %v2720_v3 = vld [vmem:[#allocation2 + $0x8] sm:$0xff]  ;;  %s3079_s2 = sld [smem:[#allocation18_spill]]  ;;  %v2491_v17 = vmov 0.0   ;;  %vm2492_vm2 = vmmov 0   ;;  %s3080_s21 = scalar_lea.vmem %s3027_s5, %s2660_s26  ;;  %v776_v43 = vlaneseq }
  0x3b   : > { %v671_v4 = vsel %vm670_vm1, %v2718_v2, 0.0  ;;  %v674_v5 = vsel %vm670_vm1, %v2720_v3, 0.0  ;;  %2129 = vmatprep.subr.bf16.mxu1 %v2491_v17  ;;  %2155 = vmatprep.subr.bf16.mxu0 %v2491_v17  ;;  %v2038_v27 = vld [vmem:[%s630_s24] ss:$0 sm:$0xff]  ;;  %s2493_s24 = smov 96   ;;  %s2494_s17 = smov 88  }
  0x3c   : > { %672 = vadd.xlane.f32.xlu0 %v671_v4  ;;  %2133 = vmatprep.mubr.msk.bf16.mxu1 %vm2492_vm2, %v2491_v17  ;;  %v2039_v31 = vld [vmem:[%s3080_s21] ss:$0 sm:$0xff]  ;;  %s2495_s12 = smov 120   ;;  %vm790_vm3 = vcmask 64512   ;;  %v2764_v44 = vshrl.u32 %v776_v43, 7  ;;  %v2766_v45 = vand.u32 127, %v776_v43 }
  0x3d   : > { %2157 = vmatprep.mubr.msk.bf16.mxu0 %vm2492_vm2, %v2491_v17  ;;  %vm842_vm5 = vcmask 130048   ;;  %s2496_s27 = smov 64   ;;  %s2497_s28 = smov 80   ;;  %vm1043_vm7 = vcmask 1043456  }
  0x3e   : > { %v2769_v46 = vadd.s32 8, %v2764_v44  ;;  %vm781_vm4 = vcmp.gt.s32.totalorder %v2766_v45, %v2764_v44  ;;  %s2498_s15 = smov 112   ;;  %s3081_s22 = sld [smem:[#allocation19_spill]] }
  0x3f   : > { %s2500_s13 = smov 48   ;;  %s2501_s19 = smov 104  }
  0x40   : > { %675 = vadd.xlane.f32.xlu0 %v674_v5  ;;  %v2333_v16 = vld [vmem:[%s3079_s2] sm:$0xff]   ;;  %v2334_v18 = vld [vmem:[%s3079_s2 + $0x8] sm:$0xff]   ;;  %vm782_vm6 = vcmp.gt.s32.totalorder %v2766_v45, %v2769_v46  ;;  %s2499_s2 = smov 56   ;;  %s2502_s23 = smov 72  }
  0x41   : > { %2130 = vmatpush3.bf16.msra.mxu1 %v2333_v16  ;;  %s2503_s25 = smov 40   ;;  %p2071_p1 = scmp.ne.s32.totalorder %s2473_s16, 1 }
  0x42   : > { %2131 = vmatprep.subr.bf16.mxu1 %v2491_v17  ;;  %vm2505_vm8 = vmmov (!%p2071_p1), 0  }
  0x44   : > { %v784_v43 = vld [vmem:[%s3081_s22 + $0x4] sm:$0xf]  ;;  %v786_v46 = vld [vmem:[%s3081_s22 + $0xc] sm:$0xf] }
  0x45   : > { %2132 = vmatpush3.bf16.msra.mxu1 %v2334_v18 }
  0x46   : > { %2137 = vmatprep.subr.bf16.mxu1 %v2491_v17 }
  0xc9   : > { %v673_v6 = vpop.xlane.xlu0 %672 }
  0xca   : > { %v678_v7 = vmul.f32 0.03125, %v673_v6 }
  0xcc   : > { %v680_v8 = vsub.f32 %v2718_v2, %v678_v7 }
  0xcd   : > { %v676_v9 = vpop.xlane.xlu0 %675 }
  0xce   : > { %v679_v10 = vmul.f32 0.03125, %v676_v9  ;;  %v682_v11 = vmul.f32 %v680_v8, %v680_v8 }
  0xd0   : > { %v681_v12 = vsub.f32 %v2720_v3, %v679_v10  ;;  %v684_v13 = vsel %vm670_vm1, %v682_v11, 0.0 }
  0xd1   : > { %685 = vadd.xlane.f32.xlu1 %v684_v13 }
  0xd2   : > { %v683_v14 = vmul.f32 %v681_v12, %v681_v12 }
  0xd4   : > { %v687_v15 = vsel %vm670_vm1, %v683_v14, 0.0 }
  0xd5   : > { %688 = vadd.xlane.f32.xlu1 %v687_v15 }
 0x15e   : > { %v686_v19 = vpop.xlane.xlu1 %685 }
 0x15f   : > { %v690_v20 = vmul.f32 0.03125, %v686_v19 }
 0x161   : > { %v692_v21 = vadd.f32 1e-05, %v690_v20 }
 0x162   : > { %v689_v22 = vpop.xlane.xlu1 %688 }
 0x163   : > { %2345 = vrsqrt.f32 %v692_v21  ;;  %v691_v23 = vmul.f32 0.03125, %v689_v22 }
 0x165   : > { %v693_v24 = vadd.f32 1e-05, %v691_v23 }
 0x167   : > { %2347 = vrsqrt.f32 %v693_v24 }
 0x16d   : > { %v2346_v25 = vpop.eup %2345 }
 0x16e   : > { %v696_v26 = vmul.f32 %v2346_v25, %v680_v8 }
 0x170   : > { %v704_v30 = vmul.f32 %v2038_v27, %v696_v26 }
 0x171   : > { %v2348_v28 = vpop.eup %2347 }
 0x172   : > { %v697_v29 = vmul.f32 %v2348_v28, %v681_v12  ;;  %v712_v33 = vadd.f32 %v2039_v31, %v704_v30 }
 0x174   : > { %v705_v32 = vmul.f32 %v2038_v27, %v697_v29 }
 0x176   : > { %v713_v34 = vadd.f32 %v2039_v31, %v705_v32 }
 0x178   : > { %v714_v35 = vpack.c.bf16 %v713_v34, %v712_v33 }
 0x17a   : > { %2134 = vmatmul.mubr.msk.bf16.vlgmr.msra.gmra.mrb[0].mxu1 %vm670_vm1, %v714_v35 }
 0x17b   : > { %2139 = vmatprep.mubr.msk.bf16.mxu1 %vm2492_vm2, %v2491_v17 }
 0x24d   : > { %v768_v36 = vpop.f32.mrb[0].mxu1 }
 0x24e   : > { %v2135_v37 = vpop.f32.mrb[1].mxu1 }
 0x24f   : > { %v771_v38 = vpop.f32.mrb[2].mxu1 }
 0x250   : > { %v2753_v39 = vpack.c.bf16 %v771_v38, %v768_v36  ;;  %v2136_v40 = vpop.f32.mrb[3].mxu1 }
 0x252   : > { %788 = vrot.lane.b32.xlu0 %v2753_v39, %s2493_s24 }
 0x256   : > { %916 = vrot.lane.b32.xlu0 %v2753_v39, %s2494_s17  ;;  %s3082_s17 = scalar_lea.vmem %s3025_s3, %s2660_s26 }
 0x25a   : > { %914 = vrot.lane.b32.xlu0 %v2753_v39, %s2495_s12 }
 0x2c4   : > { %v789_v41 = vpop.permute.xlu0 %788 }
 0x2c5   : > { %v795_v42 = vsel %vm790_vm3, %v789_v41, 0 }
 0x2c6   : > { %2138 = vmatpush3.bf16.xpose.msra.mxu1 %v795_v42 }
 0x2c7   : > { %2143 = vmatprep.subr.bf16.mxu1 %v2491_v17 }
 0x2c8   : > { %v917_v12 = vpop.permute.xlu0 %916 }
 0x2c9   : > { %v922_v14 = vsel %vm790_vm3, %v917_v12, 0 }
 0x2cc   : > { %v915_v15 = vpop.permute.xlu0 %914 }
 0x2cd   : > { %2140 = vmatmul.mubr.msk.bf16.vlgmr.msra.gmra.mrb[4].mxu1 %vm790_vm3, %v2753_v39 }
 0x2ce   : > { %2145 = vmatprep.mubr.msk.bf16.mxu1 %vm2492_vm2, %v2491_v17 }
 0x3a0   : > { %v831_v47 = vpop.f32.mrb[4].mxu1 }
 0x3a1   : > { %v838_v48 = vmul.f32 0.35355338, %v831_v47  ;;  %v2141_v49 = vpop.f32.mrb[5].mxu1  ;;  %v1045_v47 = vsel %vm1043_vm7, %v784_v43, 0 }
 0x3a2   : > { %v834_v50 = vpop.f32.mrb[6].mxu1 }
 0x3a3   : > { %v839_v51 = vmul.f32 0.35355338, %v834_v50  ;;  %v2142_v52 = vpop.f32.mrb[7].mxu1  ;;  %v840_v53 = vsel %vm781_vm4, -1e+30, %v838_v48 }
 0x3a4   : > { %v843_v54 = vsel %vm842_vm5, %v840_v53, -inf }
 0x3a5   : > { %844 = vmax.xlane.f32.xlu1 %v843_v54  ;;  %v841_v55 = vsel %vm782_vm6, -1e+30, %v839_v51 }
 0x3a6   : > { %v846_v56 = vsel %vm842_vm5, %v841_v55, -inf }
 0x3a9   : > { %847 = vmax.xlane.f32.xlu1 %v846_v56 }
 0x432   : > { %v845_v57 = vpop.xlane.xlu1 %844 }
 0x433   : > { %v849_v58 = vsub.f32 %v840_v53, %v845_v57  ;;  %v783_v53 = vld [vmem:[%s3081_s22] sm:$0xf] }
 0x434   : > { %v1092_v57 = vsel %vm1043_vm7, %v783_v53, 0 }
 0x435   : > { %v851_v59 = vmul.f32 1.442695, %v849_v58 }
 0x436   : > { %v848_v60 = vpop.xlane.xlu1 %847 }
 0x437   : > { %2349 = vpow2.f32 %v851_v59  ;;  %v850_v61 = vsub.f32 %v841_v55, %v848_v60 }
 0x439   : > { %v853_v62 = vmul.f32 1.442695, %v850_v61 }
 0x43b   : > { %2351 = vpow2.f32 %v853_v62 }
 0x441   : > { %v2350_v63 = vpop.eup %2349 }
 0x442   : > { %v855_v0 = vsel %vm842_vm5, %v2350_v63, 0.0 }
 0x443   : > { %856 = vadd.xlane.f32.xlu1 %v855_v0 }
 0x445   : > { %v2352_v1 = vpop.eup %2351 }
 0x446   : > { %v858_v4 = vsel %vm842_vm5, %v2352_v1, 0.0 }
 0x447   : > { %859 = vadd.xlane.f32.xlu1 %v858_v4 }
 0x458   : > { %866 = vrot.lane.b32.xlu1 %v2753_v39, %s2496_s27 }
 0x4d0   : > { %v857_v5 = vpop.xlane.xlu1 %856 }
 0x4d1   : > { %2353 = vrcp.f32 %v857_v5 }
 0x4d4   : > { %v860_v6 = vpop.xlane.xlu1 %859 }
 0x4d5   : > { %2355 = vrcp.f32 %v860_v6 }
 0x4d8   : > { %v867_v7 = vpop.permute.xlu1 %866 }
 0x4d9   : > { %2144 = vmatpush3.bf16.msra.mxu1 %v867_v7 }
 0x4da   : > { %2149 = vmatprep.subr.bf16.mxu1 %v2491_v17 }
 0x4db   : > { %v2354_v8 = vpop.eup %2353 }
 0x4dc   : > { %v863_v10 = vmul.f32 %v2354_v8, %v2350_v63 }
 0x4df   : > { %v2356_v9 = vpop.eup %2355 }
 0x4e0   : > { %v864_v11 = vmul.f32 %v2356_v9, %v2352_v1 }
 0x4e2   : > { %v865_v13 = vpack.c.bf16 %v864_v11, %v863_v10 }
 0x4e4   : > { %2146 = vmatmul.mubr.msk.bf16.vlgmr.msra.gmra.mrb[8].mxu1 %vm842_vm5, %v865_v13 }
 0x4e5   : > { %2150 = vmatpush3.bf16.xpose.msra.mxu1 %v922_v14  ;;  %2151 = vmatprep.mubr.msk.bf16.mxu1 %vm2492_vm2, %v2491_v17 }
 0x4e6   : > { %2161 = vmatprep.subr.bf16.mxu1 %v2491_v17 }
 0x4ec   : > { %2152 = vmatmul.mubr.msk.bf16.vlgmr.msra.gmra.mrb[12].mxu1 %vm790_vm3, %v915_v15 }
 0x4ed   : > { %2163 = vmatprep.mubr.msk.bf16.mxu1 %vm2492_vm2, %v2491_v17  ;;  %2162 = vmatpush3.bf16.msra.mxu1 %v1045_v47 }
 0x4ee   : > { %2173 = vmatprep.subr.bf16.mxu1 %v2491_v17 }
 0x5b7   : > { %v906_v16 = vpop.f32.mrb[8].mxu1 }
 0x5b8   : > { %v2147_v18 = vpop.f32.mrb[9].mxu1 }
 0x5b9   : > { %v909_v19 = vpop.f32.mrb[10].mxu1 }
 0x5ba   : > { %v913_v20 = vpack.c.bf16 %v909_v19, %v906_v16  ;;  %v2148_v21 = vpop.f32.mrb[11].mxu1 }
 0x5bf   : > { %v958_v22 = vpop.f32.mrb[12].mxu1 }
 0x5c0   : > { %v965_v23 = vmul.f32 0.35355338, %v958_v22  ;;  %v2153_v24 = vpop.f32.mrb[13].mxu1 }
 0x5c1   : > { %v961_v25 = vpop.f32.mrb[14].mxu1 }
 0x5c2   : > { %v966_v26 = vmul.f32 0.35355338, %v961_v25  ;;  %v2154_v27 = vpop.f32.mrb[15].mxu1  ;;  %v967_v28 = vsel %vm781_vm4, -1e+30, %v965_v23 }
 0x5c3   : > { %v969_v29 = vsel %vm842_vm5, %v967_v28, -inf }
 0x5c4   : > { %970 = vmax.xlane.f32.xlu0 %v969_v29  ;;  %v968_v30 = vsel %vm782_vm6, -1e+30, %v966_v26 }
 0x5c5   : > { %v972_v31 = vsel %vm842_vm5, %v968_v30, -inf }
 0x5c6   : > { %973 = vmax.xlane.f32.xlu1 %v972_v31 }
 0x5d7   : > { %1137 = vrot.lane.b32.xlu1 %v2753_v39, %s2497_s28 }
 0x5db   : > { %1135 = vrot.lane.b32.xlu1 %v2753_v39, %s2498_s15 }
 0x651   : > { %v971_v32 = vpop.xlane.xlu0 %970 }
 0x652   : > { %v975_v33 = vsub.f32 %v967_v28, %v971_v32 }
 0x653   : > { %v974_v34 = vpop.xlane.xlu1 %973 }
 0x654   : > { %v977_v35 = vmul.f32 1.442695, %v975_v33  ;;  %v976_v36 = vsub.f32 %v968_v30, %v974_v34 }
 0x656   : > { %2357 = vpow2.f32 %v977_v35  ;;  %v979_v37 = vmul.f32 1.442695, %v976_v36 }
 0x657   : > { %v1138_v60 = vpop.permute.xlu1 %1137 }
 0x658   : > { %2359 = vpow2.f32 %v979_v37  ;;  %v1143_v0 = vsel %vm790_vm3, %v1138_v60, 0 }
 0x65b   : > { %v1136_v7 = vpop.permute.xlu1 %1135 }
 0x660   : > { %v2358_v38 = vpop.eup %2357 }
 0x661   : > { %v981_v40 = vsel %vm842_vm5, %v2358_v38, 0.0 }
 0x662   : > { %v2360_v41 = vpop.eup %2359  ;;  %982 = vadd.xlane.f32.xlu0 %v981_v40 }
 0x663   : > { %v984_v42 = vsel %vm842_vm5, %v2360_v41, 0.0 }
 0x666   : > { %985 = vadd.xlane.f32.xlu0 %v984_v42 }
 0x67c   : > { %992 = vrot.lane.b32.xlu0 %v2753_v39, %s2499_s2 }
 0x6ef   : > { %v983_v48 = vpop.xlane.xlu0 %982 }
 0x6f0   : > { %2361 = vrcp.f32 %v983_v48 }
 0x6f3   : > { %v986_v49 = vpop.xlane.xlu0 %985 }
 0x6f4   : > { %2363 = vrcp.f32 %v986_v49 }
 0x6f7   : > { %v993_v50 = vpop.permute.xlu0 %992 }
 0x6f8   : > { %2156 = vmatpush3.bf16.msra.mxu0 %v993_v50  ;;  %v785_v50 = vld [vmem:[%s3081_s22 + $0x8] sm:$0xf] }
 0x6f9   : > { %2167 = vmatprep.subr.bf16.mxu0 %v2491_v17 }
 0x6fa   : > { %v2362_v51 = vpop.eup %2361 }
 0x6fb   : > { %v989_v54 = vmul.f32 %v2362_v51, %v2358_v38  ;;  %v1265_v51 = vsel %vm1043_vm7, %v785_v50, 0 }
 0x6fe   : > { %v2364_v52 = vpop.eup %2363 }
 0x6ff   : > { %v990_v55 = vmul.f32 %v2364_v52, %v2360_v41 }
 0x701   : > { %v991_v56 = vpack.c.bf16 %v990_v55, %v989_v54 }
 0x703   : > { %2158 = vmatmul.mubr.msk.bf16.vlgmr.msra.gmra.mrb[0].mxu0 %vm842_vm5, %v991_v56 }
 0x704   : > { %2168 = vmatpush3.bf16.msra.mxu0 %v1092_v57  ;;  %2169 = vmatprep.mubr.msk.bf16.mxu0 %vm2492_vm2, %v2491_v17 }
 0x705   : > { %2179 = vmatprep.subr.bf16.mxu0 %v2491_v17 }
 0x70b   : > { %2170 = vmatmul.mubr.msk.bf16.vlgmr.msra.gmra.mrb[4].mxu0 %vm790_vm3, %v913_v20 }
 0x70c   : > { %2181 = vmatprep.mubr.msk.bf16.mxu0 %vm2492_vm2, %v2491_v17 }
 0x7d6   : > { %v1032_v58 = vpop.f32.mrb[0].mxu0 }
 0x7d7   : > { %v2159_v59 = vpop.f32.mrb[1].mxu0 }
 0x7d8   : > { %v1035_v61 = vpop.f32.mrb[2].mxu0 }
 0x7d9   : > { %v1039_v62 = vpack.c.bf16 %v1035_v61, %v1032_v58  ;;  %v2160_v63 = vpop.f32.mrb[3].mxu0 }
 0x7db   : > { %2164 = vmatmul.mubr.msk.bf16.vlgmr.msra.gmra.mrb[16].mxu1 %vm790_vm3, %v1039_v62 }
 0x7dc   : > { %2174 = vmatpush3.bf16.xpose.msra.mxu1 %v1143_v0  ;;  %2175 = vmatprep.mubr.msk.bf16.mxu1 %vm2492_vm2, %v2491_v17 }
 0x7dd   : > { %2185 = vmatprep.subr.bf16.mxu1 %v2491_v17 }
 0x7de   : > { %v1128_v1 = vpop.f32.mrb[4].mxu0 }
 0x7df   : > { %v2171_v4 = vpop.f32.mrb[5].mxu0 }
 0x7e0   : > { %v1131_v5 = vpop.f32.mrb[6].mxu0 }
 0x7e1   : > { %v2172_v6 = vpop.f32.mrb[7].mxu0 }
 0x7e3   : > { %2176 = vmatmul.mubr.msk.bf16.vlgmr.msra.gmra.mrb[20].mxu1 %vm790_vm3, %v1136_v7 }
 0x7e4   : > { %2187 = vmatprep.mubr.msk.bf16.mxu1 %vm2492_vm2, %v2491_v17  ;;  %2186 = vmatpush3.bf16.msra.mxu1 %v1265_v51 }
 0x7e5   : > { %2197 = vmatprep.subr.bf16.mxu1 %v2491_v17 }
 0x8ae   : > { %v1081_v8 = vpop.f32.mrb[16].mxu1 }
 0x8af   : > { %v2829_v9 = vadd.f32 %v1128_v1, %v1081_v8  ;;  %v2165_v10 = vpop.f32.mrb[17].mxu1 }
 0x8b0   : > { %v1084_v11 = vpop.f32.mrb[18].mxu1 }
 0x8b1   : > { %v2831_v12 = vadd.f32 %v1131_v5, %v1084_v11  ;;  %v2166_v13 = vpop.f32.mrb[19].mxu1 }
 0x8b6   : > { %v1179_v14 = vpop.f32.mrb[20].mxu1 }
 0x8b7   : > { %v1186_v15 = vmul.f32 0.35355338, %v1179_v14  ;;  %v2177_v16 = vpop.f32.mrb[21].mxu1 }
 0x8b8   : > { %v1182_v18 = vpop.f32.mrb[22].mxu1 }
 0x8b9   : > { %v1187_v19 = vmul.f32 0.35355338, %v1182_v18  ;;  %v2178_v20 = vpop.f32.mrb[23].mxu1  ;;  %v1188_v21 = vsel %vm781_vm4, -1e+30, %v1186_v15  ;;  %v1440_v15 = vsel %vm1043_vm7, %v786_v46, 0 }
 0x8ba   : > { %v1190_v22 = vsel %vm842_vm5, %v1188_v21, -inf }
 0x8bb   : > { %1191 = vmax.xlane.f32.xlu1 %v1190_v22  ;;  %v1189_v23 = vsel %vm782_vm6, -1e+30, %v1187_v19 }
 0x8bc   : > { %v1193_v24 = vsel %vm842_vm5, %v1189_v23, -inf }
 0x8bd   : > { %1194 = vmax.xlane.f32.xlu0 %v1193_v24 }
 0x8cc   : > { %1213 = vrot.lane.b32.xlu1 %v2753_v39, %s2500_s13 }
 0x8d0   : > { %1310 = vrot.lane.b32.xlu1 %v2753_v39, %s2501_s19 }
 0x948   : > { %v1192_v25 = vpop.xlane.xlu1 %1191 }
 0x949   : > { %v1196_v26 = vsub.f32 %v1188_v21, %v1192_v25 }
 0x94a   : > { %v1195_v27 = vpop.xlane.xlu0 %1194 }
 0x94b   : > { %v1198_v28 = vmul.f32 1.442695, %v1196_v26  ;;  %v1197_v29 = vsub.f32 %v1189_v23, %v1195_v27 }
 0x94c   : > { %v1214_v30 = vpop.permute.xlu1 %1213 }
 0x94d   : > { %2365 = vpow2.f32 %v1198_v28  ;;  %v1200_v31 = vmul.f32 1.442695, %v1197_v29  ;;  %2180 = vmatpush3.bf16.msra.mxu0 %v1214_v30 }
 0x94e   : > { %2191 = vmatprep.subr.bf16.mxu0 %v2491_v17 }
 0x94f   : > { %2367 = vpow2.f32 %v1200_v31 }
 0x950   : > { %v1311_v49 = vpop.permute.xlu1 %1310 }
 0x957   : > { %v2366_v32 = vpop.eup %2365 }
 0x958   : > { %v1202_v33 = vsel %vm842_vm5, %v2366_v32, 0.0 }
 0x959   : > { %v2368_v34 = vpop.eup %2367  ;;  %1203 = vadd.xlane.f32.xlu0 %v1202_v33 }
 0x95a   : > { %v1205_v35 = vsel %vm842_vm5, %v2368_v34, 0.0 }
 0x95d   : > { %1206 = vadd.xlane.f32.xlu0 %v1205_v35 }
 0x973   : > { %1312 = vrot.lane.b32.xlu0 %v2753_v39, %s2502_s23  ;;  %s3085_s23 = sld [smem:[#allocation24_spill]] (!%p2071_p1) }
 0x9e6   : > { %v1204_v36 = vpop.xlane.xlu0 %1203 }
 0x9e7   : > { %2369 = vrcp.f32 %v1204_v36  ;;  %v2055_v36 = vld [vmem:[%s3082_s17] ss:$0 sm:$0xff] }
 0x9ea   : > { %v1207_v37 = vpop.xlane.xlu0 %1206 }
 0x9eb   : > { %2371 = vrcp.f32 %v1207_v37 }
 0x9ee   : > { %v1313_v43 = vpop.permute.xlu0 %1312 }
 0x9ef   : > { %v1318_v48 = vsel %vm790_vm3, %v1313_v43, 0 }
 0x9f1   : > { %v2370_v38 = vpop.eup %2369 }
 0x9f2   : > { %v1210_v41 = vmul.f32 %v2370_v38, %v2366_v32 }
 0x9f5   : > { %v2372_v40 = vpop.eup %2371 }
 0x9f6   : > { %v1211_v42 = vmul.f32 %v2372_v40, %v2368_v34 }
 0x9f8   : > { %v1212_v47 = vpack.c.bf16 %v1211_v42, %v1210_v41 }
 0x9fa   : > { %2182 = vmatmul.mubr.msk.bf16.vlgmr.msra.gmra.mrb[8].mxu0 %vm842_vm5, %v1212_v47 }
 0x9fb   : > { %2192 = vmatpush3.bf16.xpose.msra.mxu0 %v1318_v48  ;;  %2193 = vmatprep.mubr.msk.bf16.mxu0 %vm2492_vm2, %v2491_v17 }
 0x9fc   : > { %2203 = vmatprep.subr.bf16.mxu0 %v2491_v17 }
 0xa02   : > { %2194 = vmatmul.mubr.msk.bf16.vlgmr.msra.gmra.mrb[12].mxu0 %vm790_vm3, %v1311_v49 }
 0xa03   : > { %2205 = vmatprep.mubr.msk.bf16.mxu0 %vm2492_vm2, %v2491_v17  ;;  %2204 = vmatpush3.bf16.msra.mxu0 %v1440_v15  ;;  %v2057_v15 = vld [vmem:[%s639_s20] ss:$0 sm:$0xff] }
 0xa04   : > { %2217 = vmatprep.subr.bf16.mxu0 %v2491_v17 }
 0xacd   : > { %v1253_v52 = vpop.f32.mrb[8].mxu0 }
 0xace   : > { %v2183_v53 = vpop.f32.mrb[9].mxu0 }
 0xacf   : > { %v1256_v54 = vpop.f32.mrb[10].mxu0 }
 0xad0   : > { %v1260_v55 = vpack.c.bf16 %v1256_v54, %v1253_v52  ;;  %v2184_v56 = vpop.f32.mrb[11].mxu0 }
 0xad2   : > { %2188 = vmatmul.mubr.msk.bf16.vlgmr.msra.gmra.mrb[24].mxu1 %vm790_vm3, %v1260_v55 }
 0xad3   : > { %2199 = vmatprep.mubr.msk.bf16.mxu1 %vm2492_vm2, %v2491_v17 }
 0xad5   : > { %v1354_v57 = vpop.f32.mrb[12].mxu0 }
 0xad6   : > { %v1361_v58 = vmul.f32 0.35355338, %v1354_v57  ;;  %v2195_v59 = vpop.f32.mrb[13].mxu0 }
 0xad7   : > { %v1357_v60 = vpop.f32.mrb[14].mxu0  ;;  %v2336_v59 = vld [vmem:[%s2699_s30 + $0x8] sm:$0xff]  }
 0xad8   : > { %v1362_v61 = vmul.f32 0.35355338, %v1357_v60  ;;  %v2196_v62 = vpop.f32.mrb[15].mxu0  ;;  %v1363_v63 = vsel %vm781_vm4, -1e+30, %v1361_v58  ;;  %v2335_v58 = vld [vmem:[%s2699_s30] sm:$0xff]  }
 0xad9   : > { %v1365_v0 = vsel %vm842_vm5, %v1363_v63, -inf  ;;  %v2337_v60 = vld [vmem:[%s2709_s0] sm:$0xff]   ;;  %v2339_v62 = vld [vmem:[%s2709_s0 + $0x10] sm:$0xff]  }
 0xada   : > { %1366 = vmax.xlane.f32.xlu1 %v1365_v0  ;;  %v1364_v1 = vsel %vm782_vm6, -1e+30, %v1362_v61  ;;  %v2338_v61 = vld [vmem:[%s2709_s0 + $0x8] sm:$0xff]   ;;  %v2341_v0 = vld [vmem:[%s2709_s0 + $0x20] sm:$0xff]  }
 0xadb   : > { %v1368_v4 = vsel %vm842_vm5, %v1364_v1, -inf }
 0xadc   : > { %1369 = vmax.xlane.f32.xlu0 %v1368_v4 }
 0xb67   : > { %v1367_v5 = vpop.xlane.xlu1 %1366 }
 0xb68   : > { %v1371_v6 = vsub.f32 %v1363_v63, %v1367_v5  ;;  %v2340_v63 = vld [vmem:[%s2709_s0 + $0x18] sm:$0xff]  }
 0xb69   : > { %v1370_v7 = vpop.xlane.xlu0 %1369 }
 0xb6a   : > { %v1373_v8 = vmul.f32 1.442695, %v1371_v6  ;;  %v1372_v10 = vsub.f32 %v1364_v1, %v1370_v7  ;;  %v2342_v1 = vld [vmem:[%s2709_s0 + $0x28] sm:$0xff]  }
 0xb6c   : > { %2373 = vpow2.f32 %v1373_v8  ;;  %v1375_v11 = vmul.f32 1.442695, %v1372_v10 }
 0xb6e   : > { %2375 = vpow2.f32 %v1375_v11 }
 0xb76   : > { %v2374_v44 = vpop.eup %2373 }
 0xb77   : > { %v1377_v13 = vsel %vm842_vm5, %v2374_v44, 0.0 }
 0xb78   : > { %v2376_v14 = vpop.eup %2375  ;;  %1378 = vadd.xlane.f32.xlu0 %v1377_v13  ;;  %v2056_v13 = vld [vmem:[%s636_s1] ss:$0 sm:$0xff] }
 0xb79   : > { %v1380_v45 = vsel %vm842_vm5, %v2376_v14, 0.0 }
 0xb7a   : > { %1381 = vadd.xlane.f32.xlu1 %v1380_v45 }
 0xb8e   : > { %1388 = vrot.lane.b32.xlu0 %v2753_v39, %s2503_s25 }
 0xba5   : > { %v1301_v16 = vpop.f32.mrb[24].mxu1 }
 0xba6   : > { %v1308_v18 = vadd.f32 %v1301_v16, %v2829_v9  ;;  %v2189_v19 = vpop.f32.mrb[25].mxu1 }
 0xba7   : > { %v1304_v20 = vpop.f32.mrb[26].mxu1 }
 0xba8   : > { %v1309_v21 = vadd.f32 %v1304_v20, %v2831_v12  ;;  %v2190_v22 = vpop.f32.mrb[27].mxu1 }
 0xba9   : > { %v2344_v22 = vld [vmem:[%s2709_s0 + $0x38] sm:$0xff]  }
 0xc05   : > { %v1379_v23 = vpop.xlane.xlu0 %1378 }
 0xc06   : > { %2377 = vrcp.f32 %v1379_v23  ;;  %v2058_v23 = vld [vmem:[%s647_s18] ss:$0 sm:$0xff]  ;;  %s3083_s18 = sld [smem:[#allocation23_spill]] (!%p2071_p1) }
 0xc07   : > { %v1382_v24 = vpop.xlane.xlu1 %1381 }
 0xc08   : > { %2379 = vrcp.f32 %v1382_v24 }
 0xc09   : > { %v1389_v25 = vpop.permute.xlu0 %1388 }
 0xc0a   : > { %2198 = vmatpush3.bf16.msra.mxu1 %v1389_v25 }
 0xc0b   : > { %2209 = vmatprep.subr.bf16.mxu1 %v2491_v17 }
 0xc0c   : > { %s3084_s2 = smov (!%p2071_p1), %s3083_s18 }
 0xc10   : > { %v2378_v39 = vpop.eup %2377 }
 0xc11   : > { %v1385_v27 = vmul.f32 %v2378_v39, %v2374_v44 }
 0xc12   : > { %v2380_v26 = vpop.eup %2379 }
 0xc13   : > { %v1386_v28 = vmul.f32 %v2380_v26, %v2376_v14 }
 0xc15   : > { %v1387_v29 = vpack.c.bf16 %v1386_v28, %v1385_v27 }
 0xc17   : > { %2200 = vmatmul.mubr.msk.bf16.vlgmr.msra.gmra.mrb[28].mxu1 %vm842_vm5, %v1387_v29 }
 0xc18   : > { %2213 = vmatprep.mubr.msk.bf16.mxu1 %vm2492_vm2, %v2491_v17  ;;  %2210 = vmatpush3.bf16.msra.mxu1 %v2335_v58 }
 0xc19   : > { %2211 = vmatprep.subr.bf16.mxu1 %v2491_v17 }
 0xc1c   : > { %2212 = vmatpush3.bf16.msra.mxu1 %v2336_v59 }
 0xcea   : > { %v1428_v9 = vpop.f32.mrb[28].mxu1 }
 0xceb   : > { %v2201_v12 = vpop.f32.mrb[29].mxu1 }
 0xcec   : > { %v1431_v30 = vpop.f32.mrb[30].mxu1 }
 0xced   : > { %v1435_v31 = vpack.c.bf16 %v1431_v30, %v1428_v9  ;;  %v2202_v32 = vpop.f32.mrb[31].mxu1 }
 0xcef   : > { %2206 = vmatmul.mubr.msk.bf16.vlgmr.msra.gmra.mrb[16].mxu0 %vm790_vm3, %v1435_v31 }
 0xcf0   : > { %2233 = vmatprep.mubr.msk.bf16.mxu0 %vm2492_vm2, %v2491_v17  ;;  %2218 = vmatpush3.bf16.msra.mxu0 %v2337_v60 }
 0xcf1   : > { %2219 = vmatprep.subr.bf16.mxu0 %v2491_v17 }
 0xcf4   : > { %2220 = vmatpush3.bf16.msra.mxu0 %v2338_v61 }
 0xcf5   : > { %2221 = vmatprep.subr.bf16.mxu0 %v2491_v17 }
 0xcf8   : > { %2222 = vmatpush3.bf16.msra.mxu0 %v2339_v62 }
 0xcf9   : > { %2223 = vmatprep.subr.bf16.mxu0 %v2491_v17 }
 0xcfc   : > { %2224 = vmatpush3.bf16.msra.mxu0 %v2340_v63 }
 0xcfd   : > { %2225 = vmatprep.subr.bf16.mxu0 %v2491_v17 }
 0xd00   : > { %2226 = vmatpush3.bf16.msra.mxu0 %v2341_v0 }
 0xd01   : > { %2227 = vmatprep.subr.bf16.mxu0 %v2491_v17 }
 0xd04   : > { %2228 = vmatpush3.bf16.msra.mxu0 %v2342_v1 }
 0xd05   : > { %2229 = vmatprep.subr.bf16.mxu0 %v2491_v17 }
 0xdc2   : > { %v1476_v33 = vpop.f32.mrb[16].mxu0 }
 0xdc3   : > { %v1483_v34 = vadd.f32 %v1476_v33, %v1308_v18  ;;  %v2207_v35 = vpop.f32.mrb[17].mxu0 }
 0xdc4   : > { %v1479_v37 = vpop.f32.mrb[18].mxu0 }
 0xdc5   : > { %v1485_v38 = vadd.f32 %v1483_v34, %v2718_v2  ;;  %v1484_v40 = vadd.f32 %v1479_v37, %v1309_v21  ;;  %v2208_v41 = vpop.f32.mrb[19].mxu0  ;;  %v2343_v21 = vld [vmem:[%s2709_s0 + $0x30] sm:$0xff]  }
 0xdc6   : > { %2230 = vmatpush3.bf16.msra.mxu0 %v2343_v21  ;;  %v2386_v41 = vld [vmem:[%s3084_s2 + $0x8] sm:$0xff] (!%p2071_p1)  }
 0xdc7   : > { %v2890_v42 = vadd.f32 %v2055_v36, %v1485_v38  ;;  %v1486_v43 = vadd.f32 %v1484_v40, %v2720_v3  ;;  %2231 = vmatprep.subr.bf16.mxu0 %v2491_v17  ;;  %v2062_v17 = vld [vmem:[%s655_s29] ss:$0 sm:$0xff]  ;;  %v2504_v40 = vmov (!%p2071_p1), 0.0  }
 0xdc8   : > { %v2385_v38 = vld [vmem:[%s3083_s18] sm:$0xff] (!%p2071_p1)  }
 0xdc9   : > { %v2893_v47 = vadd.f32 %v2055_v36, %v1486_v43  ;;  %v1498_v48 = vsel %vm670_vm1, %v2890_v42, 0.0  ;;  %v2072_v43 = vld [vmem:[%s3085_s23] ss:$0 sm:$0xff] (!%p2071_p1) }
 0xdca   : > { %1499 = vadd.xlane.f32.xlu1 %v1498_v48  ;;  %2232 = vmatpush3.bf16.msra.mxu0 %v2344_v22 }
 0xdcb   : > { %v1501_v49 = vsel %vm670_vm1, %v2893_v47, 0.0  ;;  %2237 = vmatprep.subr.bf16.mxu0 (!%p2071_p1), %v2504_v40 }
 0xdce   : > { %1502 = vadd.xlane.f32.xlu1 %v1501_v49 }
 0xe57   : > { %v1500_v50 = vpop.xlane.xlu1 %1499 }
 0xe58   : > { %v1504_v2 = vmul.f32 0.03125, %v1500_v50 }
 0xe5a   : > { %v1506_v51 = vsub.f32 %v2890_v42, %v1504_v2 }
 0xe5b   : > { %v1503_v52 = vpop.xlane.xlu1 %1502 }
 0xe5c   : > { %v1505_v3 = vmul.f32 0.03125, %v1503_v52  ;;  %v1508_v53 = vmul.f32 %v1506_v51, %v1506_v51 }
 0xe5e   : > { %v1507_v54 = vsub.f32 %v2893_v47, %v1505_v3  ;;  %v1510_v55 = vsel %vm670_vm1, %v1508_v53, 0.0 }
 0xe5f   : > { %1511 = vadd.xlane.f32.xlu1 %v1510_v55 }
 0xe60   : > { %v1509_v56 = vmul.f32 %v1507_v54, %v1507_v54 }
 0xe62   : > { %v1513_v57 = vsel %vm670_vm1, %v1509_v56, 0.0 }
 0xe63   : > { %1514 = vadd.xlane.f32.xlu1 %v1513_v57 }
 0xeec   : > { %v1512_v4 = vpop.xlane.xlu1 %1511 }
 0xeed   : > { %v1516_v5 = vmul.f32 0.03125, %v1512_v4 }
 0xeef   : > { %v1518_v6 = vadd.f32 1e-05, %v1516_v5 }
 0xef0   : > { %v1515_v7 = vpop.xlane.xlu1 %1514 }
 0xef1   : > { %2381 = vrsqrt.f32 %v1518_v6  ;;  %v1517_v8 = vmul.f32 0.03125, %v1515_v7 }
 0xef3   : > { %v1519_v10 = vadd.f32 1e-05, %v1517_v8 }
 0xef5   : > { %2383 = vrsqrt.f32 %v1519_v10 }
 0xefb   : > { %v2382_v11 = vpop.eup %2381 }
 0xefc   : > { %v1522_v44 = vmul.f32 %v2382_v11, %v1506_v51 }
 0xefe   : > { %v1530_v45 = vmul.f32 %v2056_v13, %v1522_v44 }
 0xeff   : > { %v2384_v14 = vpop.eup %2383 }
 0xf00   : > { %v1523_v46 = vmul.f32 %v2384_v14, %v1507_v54  ;;  %v1538_v18 = vadd.f32 %v2057_v15, %v1530_v45 }
 0xf02   : > { %v1531_v16 = vmul.f32 %v2056_v13, %v1523_v46 }
 0xf04   : > { %v1539_v19 = vadd.f32 %v2057_v15, %v1531_v16 }
 0xf06   : > { %v1540_v20 = vpack.c.bf16 %v1539_v19, %v1538_v18 }
 0xf08   : > { %2214 = vmatmul.mubr.msk.bf16.vlgmr.msra.gmra.mrb[32].mxu1 %vm670_vm1, %v1540_v20 }
 0xfdb   : > { %v1601_v24 = vpop.f32.mrb[32].mxu1 }
 0xfdc   : > { %v1602_v25 = vadd.f32 %v2058_v23, %v1601_v24  ;;  %v2215_v39 = vpop.f32.mrb[33].mxu1 }
 0xfdd   : > { %v1604_v26 = vpop.f32.mrb[34].mxu1 }
 0xfde   : > { %v1605_v27 = vadd.f32 %v2058_v23, %v1604_v26  ;;  %v2216_v28 = vpop.f32.mrb[35].mxu1  ;;  %v1608_v29 = vmax.f32 %v1602_v25, 0.0 }
 0xfe0   : > { %v1609_v9 = vmax.f32 %v1605_v27, 0.0 }
 0xfe2   : > { %v1610_v12 = vpack.c.bf16 %v1609_v9, %v1608_v29 }
 0xfe4   : > { %2234 = vmatmul.mubr.bf16.vlgmr.msra.gmra.mrb[20].mxu0 %v1610_v12 }
 0xfe5   : > { %2238 = vmatpush3.bf16.msra.mxu0 (!%p2071_p1), %v2385_v38  ;;  %2241 = vmatprep.mubr.msk.bf16.mxu0 (!%p2071_p1), %vm2505_vm8, %v2504_v40 }
 0xfe6   : > { %2239 = vmatprep.subr.bf16.mxu0 (!%p2071_p1), %v2504_v40 }
 0xfe9   : > { %2240 = vmatpush3.bf16.msra.mxu0 (!%p2071_p1), %v2386_v41 }
0x10b7   : > { %v1716_v30 = vpop.f32.mrb[20].mxu0 }
0x10b8   : > { %v1717_v31 = vadd.f32 %v2062_v17, %v1716_v30  ;;  %v2235_v32 = vpop.f32.mrb[21].mxu0  ;;  %1730 = sbr.rel (%p2071_p1) target bundleno = 4823 (0x12d7), region = 84 }
0x10b9   : > { %v1719_v33 = vpop.f32.mrb[22].mxu0 }
0x10ba   : > { %v1723_v34 = vadd.f32 %v1717_v31, %v2890_v42  ;;  %v1720_v35 = vadd.f32 %v2062_v17, %v1719_v33  ;;  %v2236_v36 = vpop.f32.mrb[23].mxu0 }
0x10bc   : > { %1725 = vst.msk [vmem:[#allocation2] sm:$0xff] %vm670_vm1, %v1723_v34  ;;  %v1724_v37 = vadd.f32 %v1720_v35, %v2893_v47 }
0x10be   : > { %1726 = vst.msk [vmem:[#allocation2 + $0x8] sm:$0xff] %vm670_vm1, %v1724_v37  ;;  %v1731_v42 = vpack.c.bf16 (!%p2071_p1), %v1724_v37, %v1723_v34 }
0x10c0   : > { %2242 = vmatmul.mubr.msk.bf16.vlgmr.msra.gmra.mrb[0].mxu0 %vm670_vm1, %v1731_v42 }
0x1193   : > { %v1792_v47 = vpop.f32.mrb[0].mxu0 }
0x1194   : > { %v1793_v48 = vadd.f32 %v2072_v43, %v1792_v47  ;;  %v2243_v49 = vpop.f32.mrb[1].mxu0 }
0x1195   : > { %v1795_v50 = vpop.f32.mrb[2].mxu0 }
0x1196   : > { %1799 = vmax.xlane.f32.xlu0 %v1793_v48  ;;  %v2244_v2 = vpop.f32.mrb[3].mxu0  ;;  %v1796_v51 = vadd.f32 %v2072_v43, %v1795_v50 }
0x119a   : > { %1801 = vmax.xlane.f32.xlu0 %v1796_v51 }
0x1223   : > { %v1800_v52 = vpop.xlane.xlu0 %1799 }
0x1224   : > { %v1803_v3 = vsub.f32 %v1793_v48, %v1800_v52 }
0x1226   : > { %v1805_v53 = vmul.f32 1.442695, %v1803_v3 }
0x1227   : > { %v1802_v54 = vpop.xlane.xlu0 %1801 }
0x1228   : > { %v1804_v55 = vsub.f32 %v1796_v51, %v1802_v54  ;;  %2387 = vpow2.f32 %v1805_v53 }
0x122a   : > { %v1807_v56 = vmul.f32 1.442695, %v1804_v55 }
0x122c   : > { %2389 = vpow2.f32 %v1807_v56 }
0x1232   : > { %v2388_v57 = vpop.eup %2387 }
0x1233   : > { %1809 = vadd.xlane.f32.xlu1 %v2388_v57 }
0x1236   : > { %v2390_v58 = vpop.eup %2389 }
0x1237   : > { %1811 = vadd.xlane.f32.xlu1 %v2390_v58 }
0x12c0   : > { %v1810_v59 = vpop.xlane.xlu1 %1809 }
0x12c1   : > { %2391 = vlog2.f32 %v1810_v59 }
0x12c4   : > { %v1812_v60 = vpop.xlane.xlu1 %1811 }
0x12c5   : > { %2393 = vlog2.f32 %v1812_v60 }
0x12cb   : > { %v2392_v61 = vpop.eup %2391 }
0x12cc   : > { %v1814_v62 = vmul.f32 0.6931472, %v2392_v61 }
0x12ce   : > { %v1817_v63 = vadd.f32 %v1814_v62, %v1800_v52 }
0x12cf   : > { %v2394_v0 = vpop.eup %2393 }
0x12d0   : > { %v1819_v1 = vsub.f32 %v1793_v48, %v1817_v63  ;;  %v1816_v4 = vmul.f32 0.6931472, %v2394_v0 }
0x12d2   : > { %1821 = vst [vmem:[%s2715_s14] sm:$0xff] %v1819_v1  ;;  %v1818_v5 = vadd.f32 %v1816_v4, %v1802_v54 }
0x12d4   : > { %v1820_v6 = vsub.f32 %v1796_v51, %v1818_v5 }
0x12d6   : > { %1822 = vst [vmem:[%s2715_s14 + $0x8] sm:$0xff] %v1820_v6 }
0x12d7 PF: > { %s3086_s25 = sld [smem:[#allocation9_spill]]  ;;  %s3089_s27 = sld [smem:[#allocation25_spill]] }
0x12d8   : > { %s3087_s21 = sld [smem:[#allocation7_spill]]  ;;  %s1837_s1 = sshll.u32 %s2715_s14, 4  ;;  %s2966_s1 = int_to_ptr.vmem [resolvable:$true] %s1837_s1 }
0x12d9   : > { %s2395_s22 = scalar_lea.vmem %s2966_s1, 256  ;;  %s2506_s0 = smov [#allocation3]  }
0x12da   : > { %p2396_p2 = scmp.ne.s32.totalorder %s2966_s1, %s2395_s22  ;;  %s2399_s26 = sshll.u32 %s2506_s0, 4  ;;  %s2400_s26 = int_to_ptr.vmem [resolvable:$false] %s2399_s26 }
0x12db   : > { %s2401_s18 = scalar_lea.vmem %s2400_s26, 512  ;;  %p2402_p6 = scmp.lt.s32.totalorder %s2966_s1, %s2400_s26 }
0x12dc   : > { %p2397_p4 = pnand %p2396_p2, %p2633_p3  ;;  %p2403_p7 = scmp.lt.s32.totalorder %s2401_s18, %s2395_s22 }
0x12dd   : > { %s2086_s17 = sshll.u32 %s3086_s25, 8 }
0x12de   : > { %s2963_s28 = scalar_lea.hbm %s3089_s27, %s2086_s17  ;;  %s3090_s15 = sand.u32 1, %s3087_s21  }
0x12df   : > { %s2970_s20 = scalar_lea.sflag [#allocation4], %s3090_s15  ;;  %p2398_p5 = pneg %p2397_p4 }
0x12e0   : > { %p2404_p8 = por %p2403_p7, %p2402_p6 }
0x12e2   : > { %p2405_p10 = pnand %p2404_p8, %p2398_p5 }
0x12e4   : > { %2408 = shalt.err (!%p2405_p10)
}
0x12e5   : > { %s2409_s14 = scalar_lea.hbm %s2963_s28, 256  ;;  %s2413_s16 = scalar_lea.hbm %s3089_s27, 512 }
0x12e6   : > { %p2410_p11 = scmp.ne.s32.totalorder %s2963_s28, %s2409_s14  ;;  %p2414_p0 = scmp.lt.u32.totalorder %s2963_s28, %s3089_s27 }
0x12e7   : > { %p2415_p1 = scmp.lt.u32.totalorder %s2413_s16, %s2409_s14  ;;  %p2417_p4 = scmp.lt.u32.totalorder %s2409_s14, %s2963_s28 }
0x12e8   : > { %p2411_p12 = pnand %p2410_p11, %p2633_p3 }
0x12e9   : > { %p2416_p2 = por %p2415_p1, %p2414_p0 }
0x12ea   : > { %p2412_p13 = pneg %p2411_p12 }
0x12eb   : > { %p2418_p5 = por %p2417_p4, %p2416_p2 }
0x12ed   : > { %p2419_p6 = pnand %p2418_p5, %p2412_p13 }
0x12ef   : > { %2422 = shalt.err (!%p2419_p6)
}
0x12f0   : > { %s2507_s25 = smov 128   ;;  %s2508_s21 = smov 8  }
0x12f1   : > { %2245 = dma.vmem_to_hbm [thread:$0]  (%p2633_p3), %s2966_s1, 256, %s2963_s28, %s2970_s20, %s2507_s25, %s2507_s25, %s2508_s21  }
0x12f2 PF: > { %s3091_s17 = sld [smem:[#allocation12_spill]]  ;;  %s3092_s30 = sld [smem:[#allocation6_spill]] }
0x12f8   : > { %p2251_p7 = scmp.ge.s32.totalorder %s3091_s17, 2  ;;  %s1852_s15 = sand.u32 1, %s3092_s30  }
0x12f9   : > { %s1853_s22 = scalar_lea.sflag [#allocation4], %s1852_s15 }
0x12fa   : > { %p2248_p8 = pnand %p2251_p7, %p2643_p9 }
0x12fc   : > { %2456 = dma.done.wait (!%p2248_p8), %s1853_s22, 256  }
0x12fd   : > { %2458 = vsyncadd (!%p2248_p8), %s1853_s22, 4294967040  ;;  %s27_s20 = sadd.s32 1, %s3091_s17   ;;  %s3094_s29 = sld [smem:[#allocation7_spill]] }
0x12fe   : > { %p24_p10 = scmp.ge.s32.totalorder %s27_s20, 6   ;;  %s3095_s30 = sld [smem:[#allocation8_spill]] }
0x12ff   : > { %s3096_s15 = sld [smem:[#allocation17_spill]]  ;;  %s3097_s16 = sld [smem:[#allocation10_spill]] }
0x1300   : > { %s3098_s17 = sld [smem:[#allocation11_spill]]  ;;  %s3099_s18 = sld [smem:[#allocation13_spill]] }
0x1301   : > { %s3100_s19 = sld [smem:[#allocation15_spill]]  ;;  %26 = sbr.rel (!%p24_p10) target bundleno = 12 (0xc), region = 152 }
0x1308   :  { %1858 = vsyncpa [#allocation4], 1 }
0x1309   :  { %1860 = vsyncpa [#allocation4 + $0x1], 1 }

</bundles_post_ra>
